<compile_context>
chip_gen: v6e
topology: v6e:2x2x1
jax: 0.10.0
libtpu: 0.0.40
codegen_flags: <defaults>
</compile_context>

<pallas_src>
from functools import partial

import jax
import jax.numpy as jnp
from jax.experimental import pallas as pl
from jax.experimental.pallas import tpu as pltpu

EPS = 1e-5  # torch.nn.LayerNorm default eps


def _layernorm(x, gamma, beta):
    mu = jnp.mean(x, axis=-1, keepdims=True)
    var = jnp.mean((x - mu) ** 2, axis=-1, keepdims=True)
    return (x - mu) * jax.lax.rsqrt(var + EPS) * gamma + beta


def _gelu(x):
    # exact (erf-based) GELU, matching torch.nn.GELU() default
    return 0.5 * x * (1.0 + jax.lax.erf(x * 0.7071067811865475))


def mam3d_kernel(img_ref, we_ref, w1_ref, w2_ref, post_ref, vecd_ref,
                 veco_ref, out_ref):
    Bt, O = out_ref.shape
    N = img_ref.shape[0] // Bt

    # packed parameter rows
    be, cls, pos0 = (vecd_ref[i:i + 1, :] for i in range(3))
    b1, g1, bt1, b2, g2, bt2, g3, bt3 = (veco_ref[i:i + 1, :] for i in range(8))

    w1 = w1_ref[...]
    w2 = w2_ref[...]

    # to_patch_embedding: Linear(patch_dim, dim) on Bt*N rows (bf16 MXU, f32 acc)
    xe = jnp.dot(img_ref[...], we_ref[...],
                 preferred_element_type=jnp.float32) + be
    xp = xe + post_ref[...]                                   # (Bt*N, D) f32

    # cls token row: identical for every batch element -> compute once per tile
    # (softmax + sum pooling over the sequence is permutation invariant, so the
    #  cls row's position in the sequence does not matter)
    xc = cls + pos0                                           # (1, D) f32

    def lin_ln_gelu(x, w, b, g, bt):
        h = jnp.dot(x.astype(jnp.bfloat16), w,
                    preferred_element_type=jnp.float32) + b
        return _gelu(_layernorm(h, g, bt))

    yp = lin_ln_gelu(xp, w1, b1, g1, bt1)                     # SlEm   (Bt*N, O)
    yc = lin_ln_gelu(xc, w1, b1, g1, bt1)                     #        (1, O)
    sp = lin_ln_gelu(yp, w2, b2, g2, bt2)                     # SlAtt  (Bt*N, O)
    sc = lin_ln_gelu(yc, w2, b2, g2, bt2)                     #        (1, O)

    # per-batch softmax over the sequence (N patches + shared cls row) and
    # attention pooling, vectorised over the whole batch tile:
    #   pooled_b = sum_s y_{b,s} * softmax_s(score_{b,s})
    yp3 = yp.reshape(Bt, N, O)                                # free re-tiling
    sp3 = sp.reshape(Bt, N, O)
    yc3 = yc[None, :, :]                                      # (1, 1, O)
    sc3 = sc[None, :, :]                                      # (1, 1, O)

    m = jnp.maximum(jnp.max(sp3, axis=1, keepdims=True), sc3)  # (Bt, 1, O)
    ep = jnp.exp(sp3 - m)                                      # (Bt, N, O)
    ec = jnp.exp(sc3 - m)                                      # (Bt, 1, O)
    denom = (jnp.sum(ep, axis=1, keepdims=True) + ec).reshape(Bt, O)
    num = (jnp.sum(yp3 * ep, axis=1, keepdims=True) + yc3 * ec).reshape(Bt, O)
    pooled = num * pl.reciprocal(denom, approx=True)           # (Bt, O)

    # to_latent LayerNorm ; mlp_head = Identity
    out_ref[...] = _layernorm(pooled, g3, bt3)


def _pick_batch_tile(B, batch_tile):
    if B <= batch_tile:
        return B
    # largest multiple-of-8 divisor of B not exceeding batch_tile (keeps all
    # block sublane dims multiples of 8); fall back to the full batch.
    cands = [t for t in range(8, batch_tile + 1, 8) if B % t == 0]
    return cands[-1] if cands else B


@partial(jax.jit, static_argnames=("batch_tile",))
def mam3d_forward(img, p, *, batch_tile=8):
    B, N, P = img.shape
    D = p["we"].shape[1]
    O = p["w1"].shape[1]
    Bt = _pick_batch_tile(B, batch_tile)

    # layout plumbing only (free reshape / tiny casts), no extra HBM pass:
    img2d = img.reshape(B * N, P).astype(jnp.bfloat16)
    we = p["we"].astype(jnp.bfloat16)
    w1 = p["w1"].astype(jnp.bfloat16)
    w2 = p["w2"].astype(jnp.bfloat16)
    pos_t = jnp.tile(p["pos"][1:], (Bt, 1))                       # (Bt*N, D)
    vec_d = jnp.concatenate([p["be"], p["cls"], p["pos"][0:1]], 0)  # (3, D)
    vec_o = jnp.concatenate([p["b1"], p["g1"], p["bt1"],
                             p["b2"], p["g2"], p["bt2"],
                             p["g3"], p["bt3"]], 0)               # (8, O)

    def resident(shape):
        # constant index map -> fetched once, stays resident in VMEM
        return pl.BlockSpec(shape, lambda b: (0, 0))

    out = pl.pallas_call(
        mam3d_kernel,
        out_shape=jax.ShapeDtypeStruct((B, O), jnp.float32),
        grid=(B // Bt,),
        in_specs=[
            pl.BlockSpec((Bt * N, P), lambda b: (b, 0)),   # img tile (per step)
            resident((P, D)),                              # patch-embed W
            resident((D, O)),                              # SlEm W
            resident((O, O)),                              # SlAtt W
            resident((Bt * N, D)),                         # tiled pos[1:]
            resident((3, D)),                              # be / cls / pos[0]
            resident((8, O)),                              # biases + LN params
        ],
        out_specs=pl.BlockSpec((Bt, O), lambda b: (b, 0)),
        compiler_params=pltpu.CompilerParams(
            dimension_semantics=("parallel",)),
    )(img2d, we, w1, w2, pos_t, vec_d, vec_o)
    return out


def twomodal_forward(oct_imgs, p, *, batch_tile=8):
    """Twomodal.forward: model1 -> 4-way stack of contiguous batch chunks -> model2.

    The torch.stack of four contiguous batch slices is a free reshape
    (B, O) -> (4, B//4, O).  model2 is the identity (undefined in the source).
    """
    logits = mam3d_forward(oct_imgs, p, batch_tile=batch_tile)    # (B, O)
    B, O = logits.shape
    assert B % 4 == 0, "Twomodal stacks four equal batch chunks"
    blogits = logits.reshape(4, B // 4, O)
    # TODO(synk): model2 is constructor-injected and undefined -> identity.
    return blogits


# ----------------------- pure-JAX reference (for checking) -----------------
def mam3d_ref(img, p, mixed=True):
    """Reference model. mixed=True mirrors the kernel's bf16-matmul /
    f32-accumulate precision; mixed=False is the exact f32 original math."""
    cast = (lambda a: a.astype(jnp.bfloat16)) if mixed else (lambda a: a)
    x = jnp.dot(cast(img), cast(p["we"]),
                preferred_element_type=jnp.float32) + p["be"]     # (B, N, D)
    B = x.shape[0]
    cls = jnp.broadcast_to(p["cls"][None], (B, 1, x.shape[-1]))
    x = jnp.concatenate([cls, x], axis=1) + p["pos"][None]        # (B, S, D)
    y = _gelu(_layernorm(jnp.dot(cast(x), cast(p["w1"]),
                                 preferred_element_type=jnp.float32) + p["b1"],
                         p["g1"], p["bt1"]))
    z = _gelu(_layernorm(jnp.dot(cast(y), cast(p["w2"]),
                                 preferred_element_type=jnp.float32) + p["b2"],
                         p["g2"], p["bt2"]))
    z = jax.nn.softmax(z, axis=1)
    s = jnp.sum(y * z, axis=1)                                    # (B, O)
    return _layernorm(s, p["g3"], p["bt3"])


# ----------------------- deterministic parameter init ----------------------
def init_params(key, num_patches, patch_dim, dim, outdim):
    ks = jax.random.split(key, 5)

    def linear(k, fan_in, fan_out):
        bound = 1.0 / float(fan_in) ** 0.5
        kw, kb = jax.random.split(k)
        w = jax.random.uniform(kw, (fan_in, fan_out), jnp.float32, -bound, bound)
        b = jax.random.uniform(kb, (1, fan_out), jnp.float32, -bound, bound)
        return w, b

    we, be = linear(ks[0], patch_dim, dim)
    w1, b1 = linear(ks[1], dim, outdim)
    w2, b2 = linear(ks[2], outdim, outdim)
    pos = jax.random.normal(ks[3], (num_patches + 1, dim), jnp.float32)
    cls = jax.random.normal(ks[4], (1, dim), jnp.float32)
    ones = jnp.ones((1, outdim), jnp.float32)
    zeros = jnp.zeros((1, outdim), jnp.float32)
    return dict(we=we, be=be, pos=pos, cls=cls,
                w1=w1, b1=b1, g1=ones, bt1=zeros,
                w2=w2, b2=b2, g2=ones, bt2=zeros,
                g3=ones, bt3=zeros)


if __name__ == "__main__":
    key = jax.random.PRNGKey(0)
    B, num_patches, patch_dim, dim, outdim = 16, 8, 128, 128, 128
    kp, kx = jax.random.split(key)
    params = init_params(kp, num_patches, patch_dim, dim, outdim)
    img = jax.random.normal(kx, (B, num_patches, patch_dim), jnp.float32)

    # encoder (model1) correctness check against the pure-JAX reference
    enc = mam3d_forward(img, params, batch_tile=8)
    jax.block_until_ready(enc)
    ref = mam3d_ref(img, params, mixed=True)
    assert enc.shape == (B, outdim)
    err = float(jnp.max(jnp.abs(enc - ref)))
    assert jnp.allclose(enc, ref, rtol=2e-2, atol=2e-2), err

    # full Twomodal forward (stack reshape + identity model2)
    y = twomodal_forward(img, params, batch_tile=8)
    jax.block_until_ready(y)
    assert y.shape == (4, B // 4, outdim)
    print("KERNEL_OK")
</pallas_src>

<mosaic_0001>
module attributes {stable_mosaic.version = 11 : i64} {
  func.func @mam3d_kernel(%arg0: i32, %arg1: memref<64x128xbf16, #tpu.memory_space<vmem>>, %arg2: memref<128x128xbf16, #tpu.memory_space<vmem>>, %arg3: memref<128x128xbf16, #tpu.memory_space<vmem>>, %arg4: memref<128x128xbf16, #tpu.memory_space<vmem>>, %arg5: memref<64x128xf32, #tpu.memory_space<vmem>>, %arg6: memref<3x128xf32, #tpu.memory_space<vmem>>, %arg7: memref<8x128xf32, #tpu.memory_space<vmem>>, %arg8: memref<8x128xf32, #tpu.memory_space<vmem>>) attributes {dimension_semantics = [#tpu.dimension_semantics<parallel>], iteration_bounds = array<i64: 2>, scalar_prefetch = 0 : i64, scratch_operands = 0 : i64, tpu.core_type = #tpu.core_type<tc>, window_params = [{transform_indices = @transform_0, window_bounds = array<i64: 64, 128>}, {pipeline_mode = #tpu.pipeline_mode<synchronous>, transform_indices = @transform_1, window_bounds = array<i64: 128, 128>}, {pipeline_mode = #tpu.pipeline_mode<synchronous>, transform_indices = @transform_2, window_bounds = array<i64: 128, 128>}, {pipeline_mode = #tpu.pipeline_mode<synchronous>, transform_indices = @transform_3, window_bounds = array<i64: 128, 128>}, {pipeline_mode = #tpu.pipeline_mode<synchronous>, transform_indices = @transform_4, window_bounds = array<i64: 64, 128>}, {pipeline_mode = #tpu.pipeline_mode<synchronous>, transform_indices = @transform_5, window_bounds = array<i64: 3, 128>}, {pipeline_mode = #tpu.pipeline_mode<synchronous>, transform_indices = @transform_6, window_bounds = array<i64: 8, 128>}, {transform_indices = @transform_7, window_bounds = array<i64: 8, 128>}]} {
    %c0 = arith.constant 0 : index
    %c0_0 = arith.constant 0 : index
    %0 = vector.load %arg6[%c0, %c0_0] : memref<3x128xf32, #tpu.memory_space<vmem>>, vector<1x128xf32>
    %c1 = arith.constant 1 : index
    %c0_1 = arith.constant 0 : index
    %1 = vector.load %arg6[%c1, %c0_1] : memref<3x128xf32, #tpu.memory_space<vmem>>, vector<1x128xf32>
    %c2 = arith.constant 2 : index
    %c0_2 = arith.constant 0 : index
    %2 = vector.load %arg6[%c2, %c0_2] : memref<3x128xf32, #tpu.memory_space<vmem>>, vector<1x128xf32>
    %c0_3 = arith.constant 0 : index
    %c0_4 = arith.constant 0 : index
    %3 = vector.load %arg7[%c0_3, %c0_4] : memref<8x128xf32, #tpu.memory_space<vmem>>, vector<1x128xf32>
    %c1_5 = arith.constant 1 : index
    %c0_6 = arith.constant 0 : index
    %4 = vector.load %arg7[%c1_5, %c0_6] : memref<8x128xf32, #tpu.memory_space<vmem>>, vector<1x128xf32>
    %c2_7 = arith.constant 2 : index
    %c0_8 = arith.constant 0 : index
    %5 = vector.load %arg7[%c2_7, %c0_8] : memref<8x128xf32, #tpu.memory_space<vmem>>, vector<1x128xf32>
    %c3 = arith.constant 3 : index
    %c0_9 = arith.constant 0 : index
    %6 = vector.load %arg7[%c3, %c0_9] : memref<8x128xf32, #tpu.memory_space<vmem>>, vector<1x128xf32>
    %c4 = arith.constant 4 : index
    %c0_10 = arith.constant 0 : index
    %7 = vector.load %arg7[%c4, %c0_10] : memref<8x128xf32, #tpu.memory_space<vmem>>, vector<1x128xf32>
    %c5 = arith.constant 5 : index
    %c0_11 = arith.constant 0 : index
    %8 = vector.load %arg7[%c5, %c0_11] : memref<8x128xf32, #tpu.memory_space<vmem>>, vector<1x128xf32>
    %c6 = arith.constant 6 : index
    %c0_12 = arith.constant 0 : index
    %9 = vector.load %arg7[%c6, %c0_12] : memref<8x128xf32, #tpu.memory_space<vmem>>, vector<1x128xf32>
    %c7 = arith.constant 7 : index
    %c0_13 = arith.constant 0 : index
    %10 = vector.load %arg7[%c7, %c0_13] : memref<8x128xf32, #tpu.memory_space<vmem>>, vector<1x128xf32>
    %c0_14 = arith.constant 0 : index
    %c0_15 = arith.constant 0 : index
    %11 = vector.load %arg3[%c0_14, %c0_15] : memref<128x128xbf16, #tpu.memory_space<vmem>>, vector<128x128xbf16>
    %c0_16 = arith.constant 0 : index
    %c0_17 = arith.constant 0 : index
    %12 = vector.load %arg4[%c0_16, %c0_17] : memref<128x128xbf16, #tpu.memory_space<vmem>>, vector<128x128xbf16>
    %c0_18 = arith.constant 0 : index
    %c0_19 = arith.constant 0 : index
    %13 = vector.load %arg1[%c0_18, %c0_19] : memref<64x128xbf16, #tpu.memory_space<vmem>>, vector<64x128xbf16>
    %c0_20 = arith.constant 0 : index
    %c0_21 = arith.constant 0 : index
    %14 = vector.load %arg2[%c0_20, %c0_21] : memref<128x128xbf16, #tpu.memory_space<vmem>>, vector<128x128xbf16>
    %cst = arith.constant dense<0.000000e+00> : vector<64x128xf32>
    %15 = tpu.matmul %13, %14, %cst {dimension_numbers = #tpu.dot_dimension_numbers<[1], [0], [0], [1], [0, 0, 1, 1], [], []>} : vector<64x128xbf16>, vector<128x128xbf16>, vector<64x128xf32> -> vector<64x128xf32>
    %16 = vector.broadcast %0 : vector<1x128xf32> to vector<64x128xf32>
    %17 = arith.addf %15, %16 : vector<64x128xf32>
    %c0_22 = arith.constant 0 : index
    %c0_23 = arith.constant 0 : index
    %18 = vector.load %arg5[%c0_22, %c0_23] : memref<64x128xf32, #tpu.memory_space<vmem>>, vector<64x128xf32>
    %19 = arith.addf %17, %18 : vector<64x128xf32>
    %20 = arith.addf %1, %2 : vector<1x128xf32>
    %21 = arith.truncf %19 : vector<64x128xf32> to vector<64x128xbf16>
    %cst_24 = arith.constant dense<0.000000e+00> : vector<64x128xf32>
    %22 = tpu.matmul %21, %11, %cst_24 {dimension_numbers = #tpu.dot_dimension_numbers<[1], [0], [0], [1], [0, 0, 1, 1], [], []>} : vector<64x128xbf16>, vector<128x128xbf16>, vector<64x128xf32> -> vector<64x128xf32>
    %23 = vector.broadcast %3 : vector<1x128xf32> to vector<64x128xf32>
    %24 = arith.addf %22, %23 : vector<64x128xf32>
    %cst_25 = arith.constant dense<0.000000e+00> : vector<64xf32>
    %25 = vector.multi_reduction <add>, %24, %cst_25 [1] : vector<64x128xf32> to vector<64xf32>
    %26 = vector.shape_cast %25 : vector<64xf32> to vector<64x1xf32>
    %cst_26 = arith.constant 1.280000e+02 : f32
    %27 = vector.broadcast %cst_26 : f32 to vector<64x1xf32>
    %28 = arith.divf %26, %27 : vector<64x1xf32>
    %29 = vector.broadcast %28 : vector<64x1xf32> to vector<64x128xf32>
    %30 = arith.subf %24, %29 : vector<64x128xf32>
    %31 = arith.mulf %30, %30 : vector<64x128xf32>
    %cst_27 = arith.constant dense<0.000000e+00> : vector<64xf32>
    %32 = vector.multi_reduction <add>, %31, %cst_27 [1] : vector<64x128xf32> to vector<64xf32>
    %33 = vector.shape_cast %32 : vector<64xf32> to vector<64x1xf32>
    %cst_28 = arith.constant 1.280000e+02 : f32
    %34 = vector.broadcast %cst_28 : f32 to vector<64x1xf32>
    %35 = arith.divf %33, %34 : vector<64x1xf32>
    %36 = vector.broadcast %28 : vector<64x1xf32> to vector<64x128xf32>
    %37 = arith.subf %24, %36 : vector<64x128xf32>
    %cst_29 = arith.constant 9.99999974E-6 : f32
    %38 = vector.broadcast %cst_29 : f32 to vector<64x1xf32>
    %39 = arith.addf %35, %38 : vector<64x1xf32>
    %40 = math.rsqrt %39 : vector<64x1xf32>
    %41 = vector.broadcast %40 : vector<64x1xf32> to vector<64x128xf32>
    %42 = arith.mulf %37, %41 : vector<64x128xf32>
    %43 = vector.broadcast %4 : vector<1x128xf32> to vector<64x128xf32>
    %44 = arith.mulf %42, %43 : vector<64x128xf32>
    %45 = vector.broadcast %5 : vector<1x128xf32> to vector<64x128xf32>
    %46 = arith.addf %44, %45 : vector<64x128xf32>
    %cst_30 = arith.constant 5.000000e-01 : f32
    %47 = vector.broadcast %cst_30 : f32 to vector<64x128xf32>
    %48 = arith.mulf %47, %46 : vector<64x128xf32>
    %cst_31 = arith.constant 0.707106769 : f32
    %49 = vector.broadcast %cst_31 : f32 to vector<64x128xf32>
    %50 = arith.mulf %46, %49 : vector<64x128xf32>
    %51 = math.erf %50 : vector<64x128xf32>
    %cst_32 = arith.constant 1.000000e+00 : f32
    %52 = vector.broadcast %cst_32 : f32 to vector<64x128xf32>
    %53 = arith.addf %52, %51 : vector<64x128xf32>
    %54 = arith.mulf %48, %53 : vector<64x128xf32>
    %55 = arith.truncf %20 : vector<1x128xf32> to vector<1x128xbf16>
    %cst_33 = arith.constant dense<0.000000e+00> : vector<1x128xf32>
    %56 = tpu.matmul %55, %11, %cst_33 {dimension_numbers = #tpu.dot_dimension_numbers<[1], [0], [0], [1], [0, 0, 1, 1], [], []>} : vector<1x128xbf16>, vector<128x128xbf16>, vector<1x128xf32> -> vector<1x128xf32>
    %57 = arith.addf %56, %3 : vector<1x128xf32>
    %cst_34 = arith.constant dense<0.000000e+00> : vector<1xf32>
    %58 = vector.multi_reduction <add>, %57, %cst_34 [1] : vector<1x128xf32> to vector<1xf32>
    %59 = vector.shape_cast %58 : vector<1xf32> to vector<1x1xf32>
    %cst_35 = arith.constant 1.280000e+02 : f32
    %60 = vector.broadcast %cst_35 : f32 to vector<1x1xf32>
    %61 = arith.divf %59, %60 : vector<1x1xf32>
    %62 = vector.broadcast %61 : vector<1x1xf32> to vector<1x128xf32>
    %63 = arith.subf %57, %62 : vector<1x128xf32>
    %64 = arith.mulf %63, %63 : vector<1x128xf32>
    %cst_36 = arith.constant dense<0.000000e+00> : vector<1xf32>
    %65 = vector.multi_reduction <add>, %64, %cst_36 [1] : vector<1x128xf32> to vector<1xf32>
    %66 = vector.shape_cast %65 : vector<1xf32> to vector<1x1xf32>
    %cst_37 = arith.constant 1.280000e+02 : f32
    %67 = vector.broadcast %cst_37 : f32 to vector<1x1xf32>
    %68 = arith.divf %66, %67 : vector<1x1xf32>
    %69 = vector.broadcast %61 : vector<1x1xf32> to vector<1x128xf32>
    %70 = arith.subf %57, %69 : vector<1x128xf32>
    %cst_38 = arith.constant 9.99999974E-6 : f32
    %71 = vector.broadcast %cst_38 : f32 to vector<1x1xf32>
    %72 = arith.addf %68, %71 : vector<1x1xf32>
    %73 = math.rsqrt %72 : vector<1x1xf32>
    %74 = vector.broadcast %73 : vector<1x1xf32> to vector<1x128xf32>
    %75 = arith.mulf %70, %74 : vector<1x128xf32>
    %76 = arith.mulf %75, %4 : vector<1x128xf32>
    %77 = arith.addf %76, %5 : vector<1x128xf32>
    %cst_39 = arith.constant 5.000000e-01 : f32
    %78 = vector.broadcast %cst_39 : f32 to vector<1x128xf32>
    %79 = arith.mulf %78, %77 : vector<1x128xf32>
    %cst_40 = arith.constant 0.707106769 : f32
    %80 = vector.broadcast %cst_40 : f32 to vector<1x128xf32>
    %81 = arith.mulf %77, %80 : vector<1x128xf32>
    %82 = math.erf %81 : vector<1x128xf32>
    %cst_41 = arith.constant 1.000000e+00 : f32
    %83 = vector.broadcast %cst_41 : f32 to vector<1x128xf32>
    %84 = arith.addf %83, %82 : vector<1x128xf32>
    %85 = arith.mulf %79, %84 : vector<1x128xf32>
    %86 = arith.truncf %54 : vector<64x128xf32> to vector<64x128xbf16>
    %cst_42 = arith.constant dense<0.000000e+00> : vector<64x128xf32>
    %87 = tpu.matmul %86, %12, %cst_42 {dimension_numbers = #tpu.dot_dimension_numbers<[1], [0], [0], [1], [0, 0, 1, 1], [], []>} : vector<64x128xbf16>, vector<128x128xbf16>, vector<64x128xf32> -> vector<64x128xf32>
    %88 = vector.broadcast %6 : vector<1x128xf32> to vector<64x128xf32>
    %89 = arith.addf %87, %88 : vector<64x128xf32>
    %cst_43 = arith.constant dense<0.000000e+00> : vector<64xf32>
    %90 = vector.multi_reduction <add>, %89, %cst_43 [1] : vector<64x128xf32> to vector<64xf32>
    %91 = vector.shape_cast %90 : vector<64xf32> to vector<64x1xf32>
    %cst_44 = arith.constant 1.280000e+02 : f32
    %92 = vector.broadcast %cst_44 : f32 to vector<64x1xf32>
    %93 = arith.divf %91, %92 : vector<64x1xf32>
    %94 = vector.broadcast %93 : vector<64x1xf32> to vector<64x128xf32>
    %95 = arith.subf %89, %94 : vector<64x128xf32>
    %96 = arith.mulf %95, %95 : vector<64x128xf32>
    %cst_45 = arith.constant dense<0.000000e+00> : vector<64xf32>
    %97 = vector.multi_reduction <add>, %96, %cst_45 [1] : vector<64x128xf32> to vector<64xf32>
    %98 = vector.shape_cast %97 : vector<64xf32> to vector<64x1xf32>
    %cst_46 = arith.constant 1.280000e+02 : f32
    %99 = vector.broadcast %cst_46 : f32 to vector<64x1xf32>
    %100 = arith.divf %98, %99 : vector<64x1xf32>
    %101 = vector.broadcast %93 : vector<64x1xf32> to vector<64x128xf32>
    %102 = arith.subf %89, %101 : vector<64x128xf32>
    %cst_47 = arith.constant 9.99999974E-6 : f32
    %103 = vector.broadcast %cst_47 : f32 to vector<64x1xf32>
    %104 = arith.addf %100, %103 : vector<64x1xf32>
    %105 = math.rsqrt %104 : vector<64x1xf32>
    %106 = vector.broadcast %105 : vector<64x1xf32> to vector<64x128xf32>
    %107 = arith.mulf %102, %106 : vector<64x128xf32>
    %108 = vector.broadcast %7 : vector<1x128xf32> to vector<64x128xf32>
    %109 = arith.mulf %107, %108 : vector<64x128xf32>
    %110 = vector.broadcast %8 : vector<1x128xf32> to vector<64x128xf32>
    %111 = arith.addf %109, %110 : vector<64x128xf32>
    %cst_48 = arith.constant 5.000000e-01 : f32
    %112 = vector.broadcast %cst_48 : f32 to vector<64x128xf32>
    %113 = arith.mulf %112, %111 : vector<64x128xf32>
    %cst_49 = arith.constant 0.707106769 : f32
    %114 = vector.broadcast %cst_49 : f32 to vector<64x128xf32>
    %115 = arith.mulf %111, %114 : vector<64x128xf32>
    %116 = math.erf %115 : vector<64x128xf32>
    %cst_50 = arith.constant 1.000000e+00 : f32
    %117 = vector.broadcast %cst_50 : f32 to vector<64x128xf32>
    %118 = arith.addf %117, %116 : vector<64x128xf32>
    %119 = arith.mulf %113, %118 : vector<64x128xf32>
    %120 = arith.truncf %85 : vector<1x128xf32> to vector<1x128xbf16>
    %cst_51 = arith.constant dense<0.000000e+00> : vector<1x128xf32>
    %121 = tpu.matmul %120, %12, %cst_51 {dimension_numbers = #tpu.dot_dimension_numbers<[1], [0], [0], [1], [0, 0, 1, 1], [], []>} : vector<1x128xbf16>, vector<128x128xbf16>, vector<1x128xf32> -> vector<1x128xf32>
    %122 = arith.addf %121, %6 : vector<1x128xf32>
    %cst_52 = arith.constant dense<0.000000e+00> : vector<1xf32>
    %123 = vector.multi_reduction <add>, %122, %cst_52 [1] : vector<1x128xf32> to vector<1xf32>
    %124 = vector.shape_cast %123 : vector<1xf32> to vector<1x1xf32>
    %cst_53 = arith.constant 1.280000e+02 : f32
    %125 = vector.broadcast %cst_53 : f32 to vector<1x1xf32>
    %126 = arith.divf %124, %125 : vector<1x1xf32>
    %127 = vector.broadcast %126 : vector<1x1xf32> to vector<1x128xf32>
    %128 = arith.subf %122, %127 : vector<1x128xf32>
    %129 = arith.mulf %128, %128 : vector<1x128xf32>
    %cst_54 = arith.constant dense<0.000000e+00> : vector<1xf32>
    %130 = vector.multi_reduction <add>, %129, %cst_54 [1] : vector<1x128xf32> to vector<1xf32>
    %131 = vector.shape_cast %130 : vector<1xf32> to vector<1x1xf32>
    %cst_55 = arith.constant 1.280000e+02 : f32
    %132 = vector.broadcast %cst_55 : f32 to vector<1x1xf32>
    %133 = arith.divf %131, %132 : vector<1x1xf32>
    %134 = vector.broadcast %126 : vector<1x1xf32> to vector<1x128xf32>
    %135 = arith.subf %122, %134 : vector<1x128xf32>
    %cst_56 = arith.constant 9.99999974E-6 : f32
    %136 = vector.broadcast %cst_56 : f32 to vector<1x1xf32>
    %137 = arith.addf %133, %136 : vector<1x1xf32>
    %138 = math.rsqrt %137 : vector<1x1xf32>
    %139 = vector.broadcast %138 : vector<1x1xf32> to vector<1x128xf32>
    %140 = arith.mulf %135, %139 : vector<1x128xf32>
    %141 = arith.mulf %140, %7 : vector<1x128xf32>
    %142 = arith.addf %141, %8 : vector<1x128xf32>
    %cst_57 = arith.constant 5.000000e-01 : f32
    %143 = vector.broadcast %cst_57 : f32 to vector<1x128xf32>
    %144 = arith.mulf %143, %142 : vector<1x128xf32>
    %cst_58 = arith.constant 0.707106769 : f32
    %145 = vector.broadcast %cst_58 : f32 to vector<1x128xf32>
    %146 = arith.mulf %142, %145 : vector<1x128xf32>
    %147 = math.erf %146 : vector<1x128xf32>
    %cst_59 = arith.constant 1.000000e+00 : f32
    %148 = vector.broadcast %cst_59 : f32 to vector<1x128xf32>
    %149 = arith.addf %148, %147 : vector<1x128xf32>
    %150 = arith.mulf %144, %149 : vector<1x128xf32>
    %151 = vector.shape_cast %54 : vector<64x128xf32> to vector<8x8x128xf32>
    %152 = vector.shape_cast %119 : vector<64x128xf32> to vector<8x8x128xf32>
    %153 = vector.shape_cast %85 : vector<1x128xf32> to vector<1x1x128xf32>
    %154 = vector.shape_cast %150 : vector<1x128xf32> to vector<1x1x128xf32>
    %cst_60 = arith.constant dense<0xFF800000> : vector<8x128xf32>
    %155 = vector.multi_reduction <maximumf>, %152, %cst_60 [1] : vector<8x8x128xf32> to vector<8x128xf32>
    %156 = vector.shape_cast %155 : vector<8x128xf32> to vector<8x1x128xf32>
    %157 = vector.broadcast %154 : vector<1x1x128xf32> to vector<8x1x128xf32>
    %158 = arith.maximumf %156, %157 : vector<8x1x128xf32>
    %159 = vector.broadcast %158 : vector<8x1x128xf32> to vector<8x8x128xf32>
    %160 = arith.subf %152, %159 : vector<8x8x128xf32>
    %161 = math.exp %160 : vector<8x8x128xf32>
    %162 = vector.broadcast %154 : vector<1x1x128xf32> to vector<8x1x128xf32>
    %163 = arith.subf %162, %158 : vector<8x1x128xf32>
    %164 = math.exp %163 : vector<8x1x128xf32>
    %cst_61 = arith.constant dense<0.000000e+00> : vector<8x128xf32>
    %165 = vector.multi_reduction <add>, %161, %cst_61 [1] : vector<8x8x128xf32> to vector<8x128xf32>
    %166 = vector.shape_cast %165 : vector<8x128xf32> to vector<8x1x128xf32>
    %167 = arith.addf %166, %164 : vector<8x1x128xf32>
    %168 = vector.shape_cast %167 : vector<8x1x128xf32> to vector<8x128xf32>
    %169 = arith.mulf %151, %161 : vector<8x8x128xf32>
    %cst_62 = arith.constant dense<0.000000e+00> : vector<8x128xf32>
    %170 = vector.multi_reduction <add>, %169, %cst_62 [1] : vector<8x8x128xf32> to vector<8x128xf32>
    %171 = vector.shape_cast %170 : vector<8x128xf32> to vector<8x1x128xf32>
    %172 = vector.broadcast %153 : vector<1x1x128xf32> to vector<8x1x128xf32>
    %173 = arith.mulf %172, %164 : vector<8x1x128xf32>
    %174 = arith.addf %171, %173 : vector<8x1x128xf32>
    %175 = vector.shape_cast %174 : vector<8x1x128xf32> to vector<8x128xf32>
    %176 = tpu.reciprocal %168 {approx = true} : vector<8x128xf32> -> vector<8x128xf32>
    %177 = arith.mulf %175, %176 : vector<8x128xf32>
    %cst_63 = arith.constant dense<0.000000e+00> : vector<8xf32>
    %178 = vector.multi_reduction <add>, %177, %cst_63 [1] : vector<8x128xf32> to vector<8xf32>
    %179 = vector.shape_cast %178 : vector<8xf32> to vector<8x1xf32>
    %cst_64 = arith.constant 1.280000e+02 : f32
    %180 = vector.broadcast %cst_64 : f32 to vector<8x1xf32>
    %181 = arith.divf %179, %180 : vector<8x1xf32>
    %182 = vector.broadcast %181 : vector<8x1xf32> to vector<8x128xf32>
    %183 = arith.subf %177, %182 : vector<8x128xf32>
    %184 = arith.mulf %183, %183 : vector<8x128xf32>
    %cst_65 = arith.constant dense<0.000000e+00> : vector<8xf32>
    %185 = vector.multi_reduction <add>, %184, %cst_65 [1] : vector<8x128xf32> to vector<8xf32>
    %186 = vector.shape_cast %185 : vector<8xf32> to vector<8x1xf32>
    %cst_66 = arith.constant 1.280000e+02 : f32
    %187 = vector.broadcast %cst_66 : f32 to vector<8x1xf32>
    %188 = arith.divf %186, %187 : vector<8x1xf32>
    %189 = vector.broadcast %181 : vector<8x1xf32> to vector<8x128xf32>
    %190 = arith.subf %177, %189 : vector<8x128xf32>
    %cst_67 = arith.constant 9.99999974E-6 : f32
    %191 = vector.broadcast %cst_67 : f32 to vector<8x1xf32>
    %192 = arith.addf %188, %191 : vector<8x1xf32>
    %193 = math.rsqrt %192 : vector<8x1xf32>
    %194 = vector.broadcast %193 : vector<8x1xf32> to vector<8x128xf32>
    %195 = arith.mulf %190, %194 : vector<8x128xf32>
    %196 = vector.broadcast %9 : vector<1x128xf32> to vector<8x128xf32>
    %197 = arith.mulf %195, %196 : vector<8x128xf32>
    %198 = vector.broadcast %10 : vector<1x128xf32> to vector<8x128xf32>
    %199 = arith.addf %197, %198 : vector<8x128xf32>
    %c0_68 = arith.constant 0 : index
    %c0_69 = arith.constant 0 : index
    %200 = vector.load %arg8[%c0_68, %c0_69] : memref<8x128xf32, #tpu.memory_space<vmem>>, vector<8x128xf32>
    tpu.vector_store %arg8[%c0_68, %c0_69], %199 {strides = array<i32>} : memref<8x128xf32, #tpu.memory_space<vmem>>, vector<8x128xf32>,
    return
  }
  func.func @transform_0(%arg0: i32) -> (i32, i32) {
    %c0_i32 = arith.constant 0 : i32
    %c0_i32_0 = arith.constant 0 : i32
    return %arg0, %c0_i32 : i32, i32
  }
  func.func @transform_1(%arg0: i32) -> (i32, i32) {
    %c0_i32 = arith.constant 0 : i32
    %c0_i32_0 = arith.constant 0 : i32
    %c0_i32_1 = arith.constant 0 : i32
    return %c0_i32, %c0_i32_0 : i32, i32
  }
  func.func @transform_2(%arg0: i32) -> (i32, i32) {
    %c0_i32 = arith.constant 0 : i32
    %c0_i32_0 = arith.constant 0 : i32
    %c0_i32_1 = arith.constant 0 : i32
    return %c0_i32, %c0_i32_0 : i32, i32
  }
  func.func @transform_3(%arg0: i32) -> (i32, i32) {
    %c0_i32 = arith.constant 0 : i32
    %c0_i32_0 = arith.constant 0 : i32
    %c0_i32_1 = arith.constant 0 : i32
    return %c0_i32, %c0_i32_0 : i32, i32
  }
  func.func @transform_4(%arg0: i32) -> (i32, i32) {
    %c0_i32 = arith.constant 0 : i32
    %c0_i32_0 = arith.constant 0 : i32
    %c0_i32_1 = arith.constant 0 : i32
    return %c0_i32, %c0_i32_0 : i32, i32
  }
  func.func @transform_5(%arg0: i32) -> (i32, i32) {
    %c0_i32 = arith.constant 0 : i32
    %c0_i32_0 = arith.constant 0 : i32
    %c0_i32_1 = arith.constant 0 : i32
    return %c0_i32, %c0_i32_0 : i32, i32
  }
  func.func @transform_6(%arg0: i32) -> (i32, i32) {
    %c0_i32 = arith.constant 0 : i32
    %c0_i32_0 = arith.constant 0 : i32
    %c0_i32_1 = arith.constant 0 : i32
    return %c0_i32, %c0_i32_0 : i32, i32
  }
  func.func @transform_7(%arg0: i32) -> (i32, i32) {
    %c0_i32 = arith.constant 0 : i32
    %c0_i32_0 = arith.constant 0 : i32
    return %arg0, %c0_i32 : i32, i32
  }
}

</mosaic_0001>

<bundles_post_ra>
// kernel: mam3d_forward.1
= control target key start
LH: loop header
LB: loop body
LE: loop exit
PB: predicated region body
PF: predicated region fallthrough
CT: control target
= control target key end

     0   :  { %12 = vsyncpa [#allocation3], 0  ;;  %s2733_s0 = inlined_call_operand.vmem [shape: bf16[128,128], index: 0, kind: input, shape index: {}]   ;;  %s2734_s1 = inlined_call_operand.vmem [shape: bf16[128,128], index: 1, kind: input, shape index: {}]   ;;  %s2735_s2 = inlined_call_operand.vmem [shape: bf16[128,128], index: 2, kind: input, shape index: {}]   ;;  %s2736_s3 = inlined_call_operand.vmem [shape: bf16[128,128], index: 3, kind: input, shape index: {}]   ;;  %s2737_s4 = inlined_call_operand.vmem [shape: f32[64,128], index: 4, kind: input, shape index: {}]   ;;  %s2738_s5 = inlined_call_operand.vmem [shape: f32[3,128], index: 5, kind: input, shape index: {}]   ;;  %s2739_s6 = inlined_call_operand.vmem [shape: f32[8,128], index: 6, kind: input, shape index: {}]   ;;  %s2740_s7 = inlined_call_operand.hbm [shape: f32[16,128], index: 7, kind: output, shape index: {}]  }
   0x1   :  { %14 = vsyncpa [#allocation3 + $0x1], 0  ;;  %s2197_s24 = smov 0   ;;  %s2199_s25 = smov 0  }
   0x2   :  { %s2201_s26 = smov 0   ;;  %s2203_s27 = smov 0  }
   0x3 LB: > { %s2218_s28 = sadd.s32 4294967295, %s2152_s27   ;;  %s1693_s29 = sadd.s32 4294967294, %s2152_s27   ;;  %s2152_s27 = sphi %s2203_s27, %s2746_s27   ;;  %s2148_s26 = sphi %s2201_s26, %s2745_s26   ;;  %s2144_s25 = sphi %s2199_s25, %s2744_s25   ;;  %s2140_s24 = sphi %s2197_s24, %s2743_s24  }
   0x4   : > { %s2222_s30 = sadd.s32 1, %s2152_s27   ;;  %s179_s8 = sadd.s32 1, %s2148_s26 }
   0x5   : > { %s176_s9 = ssub.s32 %s2152_s27, %s2222_s30  ;;  %p189_p0 = scmp.ne.s32.totalorder %s2148_s26, %s2144_s25 }
   0x6   : > { %p177_p1 = scmp.eq.s32.totalorder %s176_s9, 0  ;;  %p190_p2 = scmp.eq.s32.totalorder %s2218_s28, 1 }
   0x7   : > { %p195_p3 = scmp.ne.s32.totalorder %s2144_s25, %s2140_s24  ;;  %p196_p4 = scmp.eq.s32.totalorder %s1693_s29, 1 }
   0x8   : > { %s2233_s10 = scalar_select %p177_p1, %s2148_s26, %s179_s8  }
   0x9   : > { %p2235_p5 = por %p190_p2, %p189_p0  ;;  %p2239_p6 = por %p196_p4, %p195_p3 }
   0xa   : > { %p1696_p7 = scmp.ge.s32.totalorder %s2152_s27, 1  ;;  %p241_p8 = scmp.lt.s32.totalorder %s2152_s27, 3 }
   0xc   : > { %p242_p9 = pnand %p1696_p7, %p241_p8 }
   0xd   : > { %s1698_s15 = sshll.u32 (!%p242_p9), %s2218_s28, 3  ;;  %s1732_s22 = sshll.u32 (!%p242_p9), %s2218_s28, 7 }
   0xe   : > { %245 = sbr.rel (%p242_p9) target bundleno = 1743 (0x6cf), region = 48  ;;  %p274_p10 = scmp.lt.s32.totalorder (!%p242_p9), %s1698_s15, 15 }
   0xf   : > { %s2695_s14 = scalar_lea.hbm (!%p242_p9), %s2740_s7, %s1732_s22  ;;  %s2156_s16 = smov (!%p242_p9), [#allocation2]  }
  0x10   : > { %s2096_s17 = sshll.u32 (!%p242_p9), %s2156_s16, 4  ;;  %s2097_s17 = int_to_ptr.vmem [resolvable:$false] %s2096_s17 }
  0x11   : > { %s2098_s18 = scalar_lea.vmem (!%p242_p9), %s2097_s17, 256 }
  0x13   : > { %v1942_v0 = vld [vmem:[%s2734_s1 + $0x38] sm:$0xff]   ;;  %v1943_v1 = vld [vmem:[%s2734_s1 + $0x30] sm:$0xff]   ;;  %s2748_s15 = smov (!%p274_p10, %s1698_s15), 15  ;;  %v1944_v2 = vld [vmem:[%s2734_s1 + $0x28] sm:$0xff]   ;;  %v2154_v16 = vmov 0.0   ;;  %vm2155_vm0 = vmmov 0  }
  0x14   : > { %1789 = vmatprep.subr.bf16.mxu0 %v1942_v0  ;;  %s1699_s20 = sshll.u32 %s2748_s15, 2  ;;  %v1945_v3 = vld [vmem:[%s2734_s1 + $0x20] sm:$0xff]   ;;  %v1946_v5 = vld [vmem:[%s2734_s1 + $0x18] sm:$0xff]   ;;  %v1955_v7 = vld [vmem:[%s2735_s2 + $0x30] sm:$0xff]   ;;  %vm820_vm1 = vcmask 1040384   ;;  %vm1464_vm2 = vcmask 1041409  }
  0x15   : > { %1790 = vmatpush3.bf16.msra.mxu0 %v1942_v0  ;;  %s2258_s23 = scalar_lea.vmem %s2733_s0, %s1699_s20  ;;  %v1954_v6 = vld [vmem:[%s2735_s2 + $0x38] sm:$0xff]   ;;  %v1947_v8 = vld [vmem:[%s2734_s1 + $0x10] sm:$0xff]   ;;  %v1956_v9 = vld [vmem:[%s2735_s2 + $0x28] sm:$0xff]   ;;  %vm1467_vm3 = vcmask 1042434   ;;  %vm1470_vm4 = vcmask 1043459   ;;  %vm1473_vm5 = vcmask 1044484  }
  0x16   : > { %1791 = vmatprep.subr.bf16.mxu0 %v1943_v1  ;;  %v1950_v4 = vld [vmem:[%s2258_s23] sm:$0xff]   ;;  %1813 = vmatprep.subr.bf16.mxu1 %v1954_v6  ;;  %v1948_v10 = vld [vmem:[%s2734_s1 + $0x8] sm:$0xff]   ;;  %v1958_v13 = vld [vmem:[%s2735_s2 + $0x18] sm:$0xff]   ;;  %vm1476_vm6 = vcmask 1045509   ;;  %vm1479_vm7 = vcmask 1046534   ;;  %vm1482_vm8 = vcmask 1047559  }
  0x17   : > { %1805 = vmatprep.mubr.bf16.mxu0 %v1950_v4  ;;  %1814 = vmatpush3.bf16.msra.mxu1 %v1954_v6  ;;  %v1957_v11 = vld [vmem:[%s2735_s2 + $0x20] sm:$0xff]   ;;  %v1951_v14 = vld [vmem:[%s2258_s23 + $0x8] sm:$0xff]   ;;  %v1952_v15 = vld [vmem:[%s2258_s23 + $0x10] sm:$0xff]  }
  0x18   : > { %1815 = vmatprep.subr.bf16.mxu1 %v1955_v7  ;;  %v1949_v12 = vld [vmem:[%s2734_s1] sm:$0xff]   ;;  %v1953_v17 = vld [vmem:[%s2258_s23 + $0x18] sm:$0xff]   ;;  %v1959_v18 = vld [vmem:[%s2735_s2 + $0x10] sm:$0xff]   ;;  %s270_s23 = sand.u32 1, %s2144_s25  }
  0x19   : > { %1792 = vmatpush3.bf16.msra.mxu0 %v1943_v1  ;;  %v1960_v19 = vld [vmem:[%s2735_s2 + $0x8] sm:$0xff]   ;;  %v1961_v20 = vld [vmem:[%s2735_s2] sm:$0xff]   ;;  %v491_v31 = vld [vmem:[%s2737_s4 + $0x18] sm:$0xff]  ;;  %s2682_s21 = sshll.u32 %s270_s23, 3  ;;  %s1621_s28 = scalar_lea.sflag [#allocation3], %s270_s23 }
  0x1a   : > { %1793 = vmatprep.subr.bf16.mxu0 %v1944_v2  ;;  %v281_v21 = vld [vmem:[%s2738_s5 + $0x1] sm:$0x1]  ;;  %v282_v22 = vld [vmem:[%s2738_s5 + $0x2] sm:$0x1]  ;;  %v1700_v27 = vld [vmem:[%s2738_s5] ss:$0 sm:$0xff] }
  0x1b   : > { %1816 = vmatpush3.bf16.msra.mxu1 %v1955_v7  ;;  %v504_v23 = vadd.f32 %v282_v22, %v281_v21  ;;  %v488_v34 = vld [vmem:[%s2737_s4] sm:$0xff]  ;;  %v489_v35 = vld [vmem:[%s2737_s4 + $0x8] sm:$0xff]  ;;  %v490_v36 = vld [vmem:[%s2737_s4 + $0x10] sm:$0xff]  ;;  %s272_s29 = scalar_lea.vmem [#allocation2], %s2682_s21 }
  0x1c   : > { %1817 = vmatprep.subr.bf16.mxu1 %v1956_v9  ;;  %v495_v49 = vld [vmem:[%s2737_s4 + $0x38] sm:$0xff]  ;;  %v492_v51 = vld [vmem:[%s2737_s4 + $0x20] sm:$0xff]  ;;  %v493_v53 = vld [vmem:[%s2737_s4 + $0x28] sm:$0xff]  ;;  %s1634_s8 = sshll.u32 %s272_s29, 4  ;;  %s1635_s8 = int_to_ptr.vmem [resolvable:$true] %s1634_s8 }
  0x1d   : > { %1794 = vmatpush3.bf16.msra.mxu0 %v1944_v2  ;;  %v779_v24 = vpack.c.bf16 %v504_v23, %v504_v23  ;;  %v494_v54 = vld [vmem:[%s2737_s4 + $0x30] sm:$0xff]  ;;  %v509_v2 = vlaneseq  ;;  %s2092_s15 = scalar_lea.vmem %s1635_s8, 128  ;;  %p2099_p0 = scmp.lt.s32.totalorder %s1635_s8, %s2097_s17 }
  0x1e   : > { %1795 = vmatprep.subr.bf16.mxu0 %v1945_v3  ;;  %p2093_p11 = scmp.ne.s32.totalorder %s1635_s8, %s2092_s15  ;;  %p2100_p1 = scmp.lt.s32.totalorder %s2098_s18, %s2092_s15 }
  0x1f   : > { %1818 = vmatpush3.bf16.msra.mxu1 %v1956_v9 }
  0x20   : > { %1819 = vmatprep.subr.bf16.mxu1 %v1957_v11  ;;  %p2094_p12 = pnand %p2093_p11, %p2235_p5  ;;  %p2101_p2 = por %p2100_p1, %p2099_p0 }
  0x21   : > { %1796 = vmatpush3.bf16.msra.mxu0 %v1945_v3  ;;  %v510_v3 = vshrl.u32 %v509_v2, 7  ;;  %v1965_v2 = vld [vmem:[%s2736_s3 + $0x20] sm:$0xff]  }
  0x22   : > { %1797 = vmatprep.subr.bf16.mxu0 %v1946_v5  ;;  %p2095_p13 = pneg %p2094_p12 }
  0x23   : > { %1820 = vmatpush3.bf16.msra.mxu1 %v1957_v11  ;;  %v2347_v4 = vsub.s32 0, %v510_v3  ;;  %v1966_v3 = vld [vmem:[%s2736_s3 + $0x18] sm:$0xff]  }
  0x24   : > { %1821 = vmatprep.subr.bf16.mxu1 %v1958_v13  ;;  %p2102_p3 = pnand %p2101_p2, %p2095_p13 }
  0x25   : > { %1798 = vmatpush3.bf16.msra.mxu0 %v1946_v5  ;;  %v283_v5 = vld [vmem:[%s2739_s6] sm:$0x1] }
  0x26   : > { %1799 = vmatprep.subr.bf16.mxu0 %v1947_v8 }
  0x27   : > { %1822 = vmatpush3.bf16.msra.mxu1 %v1958_v13 }
  0x28   : > { %1823 = vmatprep.subr.bf16.mxu1 %v1959_v18 }
  0x29   : > { %1800 = vmatpush3.bf16.msra.mxu0 %v1947_v8 }
  0x2a   : > { %1801 = vmatprep.subr.bf16.mxu0 %v1948_v10 }
  0x2b   : > { %1824 = vmatpush3.bf16.msra.mxu1 %v1959_v18 }
  0x2c   : > { %1825 = vmatprep.subr.bf16.mxu1 %v1960_v19 }
  0x2d   : > { %1802 = vmatpush3.bf16.msra.mxu0 %v1948_v10 }
  0x2e   : > { %1803 = vmatprep.subr.bf16.mxu0 %v1949_v12 }
  0x2f   : > { %1826 = vmatpush3.bf16.msra.mxu1 %v1960_v19 }
  0x30   : > { %1827 = vmatprep.subr.bf16.mxu1 %v1961_v20 }
  0x31   : > { %1804 = vmatpush3.bf16.msra.mxu0 %v1949_v12 }
  0x32   : > { %1837 = vmatprep.subr.bf16.mxu0 %v2154_v16 }
  0x33   : > { %1828 = vmatpush3.bf16.msra.mxu1 %v1961_v20 }
  0x34   : > { %1806 = vmatmul.mubr.bf16.vlgmr.msra.gmra.mxu0 %v1951_v14 }
  0x35   : > { %1809 = vmatprep.mubr.bf16.mxu0 %v1952_v15  ;;  %1838 = vmatpush3.bf16.msra.mxu0 %v1954_v6  ;;  %v512_v6 = vrot.slane %v283_v5, %v2347_v4 }
  0x36   : > { %1839 = vmatprep.subr.bf16.mxu0 %v2154_v16 }
  0x39   : > { %1840 = vmatpush3.bf16.msra.mxu0 %v1955_v7 }
  0x3a   : > { %1841 = vmatprep.subr.bf16.mxu0 %v2154_v16 }
  0x3c   : > { %1810 = vmatmul.mubr.bf16.gmra.mxu0 %v1953_v17 }
  0x3d   : > { %1842 = vmatpush3.bf16.msra.mxu0 %v1956_v9  ;;  %1853 = vmatprep.mubr.msk.bf16.mxu0 %vm2155_vm0, %v2154_v16 }
  0x3e   : > { %1843 = vmatprep.subr.bf16.mxu0 %v2154_v16 }
  0x41   : > { %1844 = vmatpush3.bf16.msra.mxu0 %v1957_v11 }
  0x42   : > { %1845 = vmatprep.subr.bf16.mxu0 %v2154_v16 }
  0x45   : > { %1846 = vmatpush3.bf16.msra.mxu0 %v1958_v13 }
  0x46   : > { %1847 = vmatprep.subr.bf16.mxu0 %v2154_v16 }
  0x49   : > { %1848 = vmatpush3.bf16.msra.mxu0 %v1959_v18 }
  0x4a   : > { %1849 = vmatprep.subr.bf16.mxu0 %v2154_v16 }
  0x4d   : > { %1850 = vmatpush3.bf16.msra.mxu0 %v1960_v19 }
  0x4e   : > { %1851 = vmatprep.subr.bf16.mxu0 %v2154_v16 }
  0x51   : > { %1852 = vmatpush3.bf16.msra.mxu0 %v1961_v20 }
  0x52   : > { %1881 = vmatprep.subr.bf16.mxu0 %v2154_v16 }
  0x54   : > { %1854 = vmatmul.mubr.bf16.vlgmr.msra.gmra.mxu0 %v779_v24 }
  0x55   : > { %1897 = vmatprep.mubr.msk.bf16.mxu0 %vm2155_vm0, %v2154_v16 }
  0xf4   : > { %v1807_v25 = vpop.f32.mrf.mxu0 }
  0xf5   : > { %v466_v32 = vadd.f32 %v1807_v25, %v1700_v27 }
  0xf6   : > { %v457_v26 = vpop.f32.mrf.mxu0 }
  0xf7   : > { %v458_v29 = vadd.f32 %v1700_v27, %v457_v26  ;;  %v498_v42 = vadd.f32 %v490_v36, %v466_v32 }
  0xf8   : > { %v1808_v28 = vpop.f32.mrf.mxu0 }
  0xf9   : > { %v469_v30 = vadd.f32 %v1808_v28, %v1700_v27  ;;  %v496_v40 = vadd.f32 %v488_v34, %v458_v29 }
  0xfa   : > { %v460_v33 = vpop.f32.mrf.mxu0 }
  0xfb   : > { %v461_v37 = vadd.f32 %v1700_v27, %v460_v33  ;;  %v499_v38 = vadd.f32 %v491_v31, %v469_v30 }
  0xfc   : > { %v1811_v39 = vpop.f32.mrf.mxu0 }
  0xfd   : > { %v497_v41 = vadd.f32 %v489_v35, %v461_v37  ;;  %v506_v46 = vpack.c.bf16 %v499_v38, %v498_v42  ;;  %v482_v50 = vadd.f32 %v1811_v39, %v1700_v27 }
  0xfe   : > { %v473_v43 = vpop.f32.mrf.mxu0 }
  0xff   : > { %v505_v44 = vpack.c.bf16 %v497_v41, %v496_v40  ;;  %v474_v47 = vadd.f32 %v1700_v27, %v473_v43  ;;  %v502_v59 = vadd.f32 %v494_v54, %v482_v50 }
 0x100   : > { %v1812_v45 = vpop.f32.mrf.mxu0 }
 0x101   : > { %v485_v48 = vadd.f32 %v1812_v45, %v1700_v27  ;;  %1829 = vmatprep.mubr.bf16.mxu1 %v505_v44  ;;  %v500_v57 = vadd.f32 %v492_v51, %v474_v47 }
 0x102   : > { %v476_v52 = vpop.f32.mrf.mxu0  ;;  %1830 = vmatmul.mubr.bf16.vlgmr.msra.gmra.mxu1 %v506_v46 }
 0x103   : > { %v477_v55 = vadd.f32 %v1700_v27, %v476_v52  ;;  %v503_v56 = vadd.f32 %v495_v49, %v485_v48 }
 0x105   : > { %v501_v58 = vadd.f32 %v493_v53, %v477_v55  ;;  %v508_v61 = vpack.c.bf16 %v503_v56, %v502_v59 }
 0x107   : > { %v507_v60 = vpack.c.bf16 %v501_v58, %v500_v57 }
 0x109   : > { %1833 = vmatprep.mubr.bf16.mxu1 %v507_v60 }
 0x10a   : > { %1834 = vmatmul.mubr.bf16.gmra.mxu1 %v508_v61 }
 0x114   : > { %v814_v62 = vpop.f32.mrf.mxu0 }
 0x115   : > { %v815_v21 = vadd.f32 %v814_v62, %v283_v5  ;;  %v1967_v5 = vld [vmem:[%s2736_s3 + $0x10] sm:$0xff]  }
 0x116   : > { %v1855_v63 = vpop.f32.mrf.mxu0 }
 0x117   : > { %v821_v24 = vsel %vm820_vm1, %v815_v21, 0.0  ;;  %v1962_v63 = vld [vmem:[%s2736_s3 + $0x38] sm:$0xff]  }
 0x118   : > { %v817_v0 = vpop.f32.mrf.mxu0  ;;  %1857 = vmatprep.subr.bf16.mxu1 %v1962_v63  ;;  %1882 = vmatpush3.bf16.msra.mxu0 %v1962_v63 }
 0x119   : > { %1858 = vmatpush3.bf16.msra.mxu1 %v1962_v63  ;;  %1883 = vmatprep.subr.bf16.mxu0 %v2154_v16  ;;  %v1963_v0 = vld [vmem:[%s2736_s3 + $0x30] sm:$0xff]  }
 0x11a   : > { %v1856_v1 = vpop.f32.mrf.mxu0  ;;  %1859 = vmatprep.subr.bf16.mxu1 %v1963_v0 }
 0x11b   : > { %v1964_v1 = vld [vmem:[%s2736_s3 + $0x28] sm:$0xff]  }
 0x11c   : > { %1884 = vmatpush3.bf16.msra.mxu0 %v1963_v0 }
 0x11d   : > { %1860 = vmatpush3.bf16.msra.mxu1 %v1963_v0  ;;  %1885 = vmatprep.subr.bf16.mxu0 %v2154_v16 }
 0x11e   : > { %1861 = vmatprep.subr.bf16.mxu1 %v1964_v1 }
 0x120   : > { %1886 = vmatpush3.bf16.msra.mxu0 %v1964_v1 }
 0x121   : > { %1862 = vmatpush3.bf16.msra.mxu1 %v1964_v1  ;;  %1887 = vmatprep.subr.bf16.mxu0 %v2154_v16 }
 0x122   : > { %1863 = vmatprep.subr.bf16.mxu1 %v1965_v2 }
 0x124   : > { %1888 = vmatpush3.bf16.msra.mxu0 %v1965_v2 }
 0x125   : > { %1864 = vmatpush3.bf16.msra.mxu1 %v1965_v2  ;;  %1889 = vmatprep.subr.bf16.mxu0 %v2154_v16 }
 0x126   : > { %1865 = vmatprep.subr.bf16.mxu1 %v1966_v3 }
 0x128   : > { %1890 = vmatpush3.bf16.msra.mxu0 %v1966_v3 }
 0x129   : > { %1866 = vmatpush3.bf16.msra.mxu1 %v1966_v3  ;;  %1891 = vmatprep.subr.bf16.mxu0 %v2154_v16 }
 0x12a   : > { %1867 = vmatprep.subr.bf16.mxu1 %v1967_v5 }
 0x12c   : > { %1892 = vmatpush3.bf16.msra.mxu0 %v1967_v5 }
 0x12d   : > { %1868 = vmatpush3.bf16.msra.mxu1 %v1967_v5  ;;  %1893 = vmatprep.subr.bf16.mxu0 %v2154_v16 }
 0x1c2   : > { %v1831_v7 = vpop.f32.mrf.mxu1 }
 0x1c3   : > { %v604_v8 = vadd.f32 %v1831_v7, %v512_v6  ;;  %v1969_v7 = vld [vmem:[%s2736_s3] sm:$0xff]  }
 0x1c4   : > { %v595_v9 = vpop.f32.mrf.mxu1 }
 0x1c5   : > { %v596_v10 = vadd.f32 %v595_v9, %v512_v6  ;;  %630 = vadd.xlane.f32.xlu1 %v604_v8 }
 0x1c6   : > { %v1832_v11 = vpop.f32.mrf.mxu1 }
 0x1c7   : > { %v607_v12 = vadd.f32 %v1832_v11, %v512_v6  ;;  %626 = vadd.xlane.f32.xlu0 %v596_v10 }
 0x1c8   : > { %v598_v13 = vpop.f32.mrf.mxu1 }
 0x1c9   : > { %v599_v14 = vadd.f32 %v598_v13, %v512_v6  ;;  %632 = vadd.xlane.f32.xlu1 %v607_v12 }
 0x1ca   : > { %v1835_v15 = vpop.f32.mrf.mxu1 }
 0x1cb   : > { %628 = vadd.xlane.f32.xlu0 %v599_v14  ;;  %v620_v22 = vadd.f32 %v1835_v15, %v512_v6 }
 0x1cc   : > { %v611_v17 = vpop.f32.mrf.mxu1 }
 0x1cd   : > { %v612_v18 = vadd.f32 %v611_v17, %v512_v6 }
 0x1ce   : > { %v1836_v19 = vpop.f32.mrf.mxu1 }
 0x1cf   : > { %634 = vadd.xlane.f32.xlu0 %v612_v18  ;;  %v623_v25 = vadd.f32 %v1836_v19, %v512_v6 }
 0x1d0   : > { %v614_v20 = vpop.f32.mrf.mxu1 }
 0x1d1   : > { %v615_v23 = vadd.f32 %v614_v20, %v512_v6  ;;  %v1968_v6 = vld [vmem:[%s2736_s3 + $0x8] sm:$0xff]  }
 0x1d2   : > { %1869 = vmatprep.subr.bf16.mxu1 %v1968_v6  ;;  %1894 = vmatpush3.bf16.msra.mxu0 %v1968_v6 }
 0x1d3   : > { %636 = vadd.xlane.f32.xlu1 %v615_v23  ;;  %638 = vadd.xlane.f32.xlu0 %v620_v22 }
 0x1d4   : > { %1870 = vmatpush3.bf16.msra.mxu1 %v1968_v6  ;;  %1895 = vmatprep.subr.bf16.mxu0 %v2154_v16 }
 0x1d5   : > { %1871 = vmatprep.subr.bf16.mxu1 %v1969_v7 }
 0x1d6   : > { %1896 = vmatpush3.bf16.msra.mxu0 %v1969_v7 }
 0x1d7   : > { %640 = vadd.xlane.f32.xlu1 %v623_v25  ;;  %822 = vadd.xlane.f32.xlu0 %v821_v24 }
 0x1d8   : > { %1872 = vmatpush3.bf16.msra.mxu1 %v1969_v7 }
 0x24e   : > { %v631_v26 = vpop.xlane.xlu1 %630 }
 0x24f   : > { %v645_v28 = vmul.f32 0.0078125, %v631_v26 }
 0x250   : > { %v627_v27 = vpop.xlane.xlu0 %626 }
 0x251   : > { %v643_v29 = vmul.f32 0.0078125, %v627_v27  ;;  %v2356_v33 = vsub.f32 %v604_v8, %v645_v28  ;;  %v284_v27 = vld [vmem:[%s2739_s6 + $0x1] sm:$0x1] }
 0x252   : > { %v633_v30 = vpop.xlane.xlu1 %632 }
 0x253   : > { %v2354_v31 = vsub.f32 %v596_v10, %v643_v29  ;;  %v646_v34 = vmul.f32 0.0078125, %v633_v30  ;;  %v661_v41 = vmul.f32 %v2356_v33, %v2356_v33 }
 0x254   : > { %v629_v32 = vpop.xlane.xlu0 %628 }
 0x255   : > { %v644_v35 = vmul.f32 0.0078125, %v629_v32  ;;  %v659_v36 = vmul.f32 %v2354_v31, %v2354_v31  ;;  %v2362_v39 = vsub.f32 %v607_v12, %v646_v34  ;;  %v285_v32 = vld [vmem:[%s2739_s6 + $0x2] sm:$0x1]  ;;  %v718_v34 = vrot.slane %v284_v27, %v2347_v4 }
 0x257   : > { %v2360_v37 = vsub.f32 %v599_v14, %v644_v35  ;;  %667 = vadd.xlane.f32.xlu1 %v659_v36  ;;  %v662_v48 = vmul.f32 %v2362_v39, %v2362_v39 }
 0x258   : > { %v635_v38 = vpop.xlane.xlu0 %634 }
 0x259   : > { %v647_v40 = vmul.f32 0.0078125, %v635_v38  ;;  %v660_v42 = vmul.f32 %v2360_v37, %v2360_v37 }
 0x25b   : > { %v2368_v43 = vsub.f32 %v612_v18, %v647_v40  ;;  %671 = vadd.xlane.f32.xlu1 %v661_v41  ;;  %669 = vadd.xlane.f32.xlu0 %v660_v42  ;;  %v730_v42 = vrot.slane %v285_v32, %v2347_v4 }
 0x25c   : > { %v637_v44 = vpop.xlane.xlu1 %636  ;;  %v639_v45 = vpop.xlane.xlu0 %638 }
 0x25d   : > { %v648_v46 = vmul.f32 0.0078125, %v637_v44  ;;  %v649_v47 = vmul.f32 0.0078125, %v639_v45  ;;  %v663_v49 = vmul.f32 %v2368_v43, %v2368_v43 }
 0x25f   : > { %v2374_v50 = vsub.f32 %v615_v23, %v648_v46  ;;  %v2376_v51 = vsub.f32 %v620_v22, %v649_v47  ;;  %673 = vadd.xlane.f32.xlu0 %v662_v48  ;;  %675 = vadd.xlane.f32.xlu1 %v663_v49 }
 0x260   : > { %v641_v52 = vpop.xlane.xlu1 %640  ;;  %v823_v53 = vpop.xlane.xlu0 %822 }
 0x261   : > { %v650_v54 = vmul.f32 0.0078125, %v641_v52  ;;  %v824_v55 = vmul.f32 0.0078125, %v823_v53  ;;  %v664_v56 = vmul.f32 %v2374_v50, %v2374_v50  ;;  %v665_v57 = vmul.f32 %v2376_v51, %v2376_v51 }
 0x263   : > { %v2382_v58 = vsub.f32 %v623_v25, %v650_v54  ;;  %v2384_v59 = vsub.f32 %v815_v21, %v824_v55  ;;  %677 = vadd.xlane.f32.xlu0 %v664_v56  ;;  %679 = vadd.xlane.f32.xlu1 %v665_v57 }
 0x265   : > { %v666_v60 = vmul.f32 %v2382_v58, %v2382_v58  ;;  %v826_v61 = vmul.f32 %v2384_v59, %v2384_v59 }
 0x267   : > { %681 = vadd.xlane.f32.xlu0 %v666_v60  ;;  %v827_v62 = vsel %vm820_vm1, %v826_v61, 0.0 }
 0x268   : > { %828 = vadd.xlane.f32.xlu1 %v827_v62 }
 0x2e0   : > { %v668_v8 = vpop.xlane.xlu1 %667 }
 0x2e1   : > { %v683_v9 = vmul.f32 0.0078125, %v668_v8 }
 0x2e3   : > { %v691_v10 = vadd.f32 1e-05, %v683_v9 }
 0x2e4   : > { %v672_v11 = vpop.xlane.xlu1 %671  ;;  %v670_v12 = vpop.xlane.xlu0 %669 }
 0x2e5   : > { %1970 = vrsqrt.f32 %v691_v10  ;;  %v685_v13 = vmul.f32 0.0078125, %v672_v11  ;;  %v684_v14 = vmul.f32 0.0078125, %v670_v12 }
 0x2e7   : > { %v693_v15 = vadd.f32 1e-05, %v685_v13  ;;  %v692_v17 = vadd.f32 1e-05, %v684_v14 }
 0x2e8   : > { %v676_v18 = vpop.xlane.xlu1 %675  ;;  %v674_v19 = vpop.xlane.xlu0 %673 }
 0x2e9   : > { %1972 = vrsqrt.f32 %v693_v15  ;;  %v687_v16 = vmul.f32 0.0078125, %v676_v18  ;;  %v686_v20 = vmul.f32 0.0078125, %v674_v19 }
 0x2ea   : > { %1974 = vrsqrt.f32 %v692_v17 }
 0x2eb   : > { %v695_v21 = vadd.f32 1e-05, %v687_v16  ;;  %v694_v22 = vadd.f32 1e-05, %v686_v20 }
 0x2ec   : > { %v680_v23 = vpop.xlane.xlu1 %679  ;;  %v678_v24 = vpop.xlane.xlu0 %677 }
 0x2ed   : > { %1976 = vrsqrt.f32 %v695_v21  ;;  %v689_v25 = vmul.f32 0.0078125, %v680_v23  ;;  %v688_v26 = vmul.f32 0.0078125, %v678_v24 }
 0x2ee   : > { %1978 = vrsqrt.f32 %v694_v22 }
 0x2ef   : > { %v697_v28 = vadd.f32 1e-05, %v689_v25  ;;  %v696_v29 = vadd.f32 1e-05, %v688_v26 }
 0x2f0   : > { %v682_v30 = vpop.xlane.xlu0 %681 }
 0x2f1   : > { %1980 = vrsqrt.f32 %v697_v28  ;;  %v690_v35 = vmul.f32 0.0078125, %v682_v30  ;;  %v829_v36 = vpop.xlane.xlu1 %828 }
 0x2f2   : > { %v1971_v38 = vpop.eup %1970  ;;  %1982 = vrsqrt.f32 %v696_v29  ;;  %v830_v40 = vmul.f32 0.0078125, %v829_v36 }
 0x2f3   : > { %v698_v41 = vadd.f32 1e-05, %v690_v35  ;;  %v707_v44 = vmul.f32 %v1971_v38, %v2354_v31 }
 0x2f4   : > { %v831_v45 = vadd.f32 1e-05, %v830_v40 }
 0x2f5   : > { %1984 = vrsqrt.f32 %v698_v41  ;;  %v719_v46 = vmul.f32 %v718_v34, %v707_v44 }
 0x2f6   : > { %v1973_v47 = vpop.eup %1972  ;;  %1986 = vrsqrt.f32 %v831_v45 }
 0x2f7   : > { %v1975_v48 = vpop.eup %1974  ;;  %v709_v49 = vmul.f32 %v1973_v47, %v2356_v33  ;;  %v731_v52 = vadd.f32 %v730_v42, %v719_v46 }
 0x2f8   : > { %v708_v53 = vmul.f32 %v1975_v48, %v2360_v37 }
 0x2f9   : > { %v721_v54 = vmul.f32 %v718_v34, %v709_v49  ;;  %v747_v55 = vmul.f32 0.70710677, %v731_v52  ;;  %v739_v26 = vmul.f32 0.5, %v731_v52 }
 0x2fa   : > { %v1977_v56 = vpop.eup %1976  ;;  %v720_v57 = vmul.f32 %v718_v34, %v708_v53 }
 0x2fb   : > { %v1979_v60 = vpop.eup %1978  ;;  %v733_v61 = vadd.f32 %v730_v42, %v721_v54  ;;  %v711_v62 = vmul.f32 %v1977_v56, %v2368_v43  ;;  %1988 = verf.f32 %v747_v55 }
 0x2fc   : > { %v710_v31 = vmul.f32 %v1979_v60, %v2362_v39  ;;  %v732_v63 = vadd.f32 %v730_v42, %v720_v57 }
 0x2fd   : > { %v749_v0 = vmul.f32 0.70710677, %v733_v61  ;;  %v723_v1 = vmul.f32 %v718_v34, %v711_v62  ;;  %v741_v36 = vmul.f32 0.5, %v733_v61 }
 0x2fe   : > { %v1981_v2 = vpop.eup %1980  ;;  %v722_v3 = vmul.f32 %v718_v34, %v710_v31  ;;  %v748_v33 = vmul.f32 0.70710677, %v732_v63 }
 0x2ff   : > { %v1983_v5 = vpop.eup %1982  ;;  %1990 = verf.f32 %v749_v0  ;;  %v735_v37 = vadd.f32 %v730_v42, %v723_v1  ;;  %v713_v6 = vmul.f32 %v1981_v2, %v2376_v51 }
 0x300   : > { %1992 = verf.f32 %v748_v33  ;;  %v734_v7 = vadd.f32 %v730_v42, %v722_v3  ;;  %v712_v8 = vmul.f32 %v1983_v5, %v2374_v50 }
 0x301   : > { %v751_v9 = vmul.f32 0.70710677, %v735_v37  ;;  %v725_v43 = vmul.f32 %v718_v34, %v713_v6  ;;  %v743_v48 = vmul.f32 0.5, %v735_v37  ;;  %v286_v37 = vld [vmem:[%s2739_s6 + $0x3] sm:$0x1] }
 0x302   : > { %v1985_v10 = vpop.eup %1984  ;;  %v750_v39 = vmul.f32 0.70710677, %v734_v7  ;;  %v724_v11 = vmul.f32 %v718_v34, %v712_v8  ;;  %v742_v38 = vmul.f32 0.5, %v734_v7  ;;  %v848_v6 = vrot.slane %v286_v37, %v2347_v4 }
 0x303   : > { %v1987_v12 = vpop.eup %1986  ;;  %1994 = verf.f32 %v751_v9  ;;  %v714_v13 = vmul.f32 %v1985_v10, %v2382_v58  ;;  %v737_v14 = vadd.f32 %v730_v42, %v725_v43 }
 0x304   : > { %v833_v15 = vmul.f32 %v1987_v12, %v2384_v59  ;;  %1996 = verf.f32 %v750_v39  ;;  %v736_v17 = vadd.f32 %v730_v42, %v724_v11  ;;  %v740_v59 = vmul.f32 0.5, %v732_v63 }
 0x305   : > { %v726_v18 = vmul.f32 %v718_v34, %v714_v13  ;;  %v753_v51 = vmul.f32 0.70710677, %v737_v14  ;;  %v745_v60 = vmul.f32 0.5, %v737_v14 }
 0x306   : > { %v834_v19 = vmul.f32 %v833_v15, %v284_v27  ;;  %v752_v16 = vmul.f32 0.70710677, %v736_v17  ;;  %v744_v49 = vmul.f32 0.5, %v736_v17 }
 0x307   : > { %v738_v20 = vadd.f32 %v730_v42, %v726_v18  ;;  %1998 = verf.f32 %v753_v51 }
 0x308   : > { %v835_v50 = vadd.f32 %v834_v19, %v285_v32  ;;  %2000 = verf.f32 %v752_v16  ;;  %v1989_v21 = vpop.eup %1988 }
 0x309   : > { %v754_v22 = vmul.f32 0.70710677, %v738_v20  ;;  %v763_v58 = vadd.f32 1.0, %v1989_v21  ;;  %v746_v61 = vmul.f32 0.5, %v738_v20 }
 0x30a   : > { %v837_v23 = vmul.f32 0.70710677, %v835_v50  ;;  %v836_v31 = vmul.f32 0.5, %v835_v50 }
 0x30b   : > { %2002 = verf.f32 %v754_v22  ;;  %v2439_v30 = vmul.f32 %v763_v58, %v739_v26 }
 0x30c   : > { %v1991_v24 = vpop.eup %1990  ;;  %2004 = verf.f32 %v837_v23 }
 0x30d   : > { %v1993_v25 = vpop.eup %1992  ;;  %v765_v34 = vadd.f32 1.0, %v1991_v24 }
 0x30e   : > { %v764_v28 = vadd.f32 1.0, %v1993_v25 }
 0x30f   : > { %v2445_v42 = vmul.f32 %v765_v34, %v741_v36 }
 0x310   : > { %v1995_v29 = vpop.eup %1994  ;;  %v2441_v27 = vmul.f32 %v764_v28, %v740_v59 }
 0x311   : > { %v1997_v35 = vpop.eup %1996  ;;  %v767_v45 = vadd.f32 1.0, %v1995_v29 }
 0x312   : > { %v841_v32 = vpack.c.bf16 %v2441_v27, %v2439_v30  ;;  %v766_v40 = vadd.f32 1.0, %v1997_v35 }
 0x313   : > { %v2451_v55 = vmul.f32 %v767_v45, %v743_v48 }
 0x314   : > { %v1999_v41 = vpop.eup %1998  ;;  %1873 = vmatprep.mubr.bf16.mxu1 %v841_v32  ;;  %v2447_v44 = vmul.f32 %v766_v40, %v742_v38 }
 0x315   : > { %v2001_v46 = vpop.eup %2000  ;;  %v769_v53 = vadd.f32 1.0, %v1999_v41 }
 0x316   : > { %v842_v47 = vpack.c.bf16 %v2447_v44, %v2445_v42  ;;  %v768_v52 = vadd.f32 1.0, %v2001_v46 }
 0x317   : > { %v2457_v1 = vmul.f32 %v769_v53, %v745_v60 }
 0x318   : > { %v2003_v54 = vpop.eup %2002  ;;  %1874 = vmatmul.mubr.bf16.vlgmr.msra.gmra.mxu1 %v842_v47  ;;  %v2453_v56 = vmul.f32 %v768_v52, %v744_v49 }
 0x319   : > { %v2005_v57 = vpop.eup %2004  ;;  %v770_v62 = vadd.f32 1.0, %v2003_v54 }
 0x31a   : > { %v839_v63 = vadd.f32 1.0, %v2005_v57  ;;  %v843_v0 = vpack.c.bf16 %v2453_v56, %v2451_v55 }
 0x31b   : > { %v2459_v2 = vmul.f32 %v770_v62, %v746_v61 }
 0x31c   : > { %v2461_v3 = vmul.f32 %v839_v63, %v836_v31  ;;  %1877 = vmatprep.mubr.bf16.mxu1 %v843_v0 }
 0x31d   : > { %v844_v33 = vpack.c.bf16 %v2459_v2, %v2457_v1 }
 0x31e   : > { %v1114_v5 = vpack.c.bf16 %v2461_v3, %v2461_v3 }
 0x320   : > { %1878 = vmatmul.mubr.bf16.gmra.mxu1 %v844_v33  ;;  %1898 = vmatmul.mubr.bf16.vlgmr.msra.gmra.mxu0 %v1114_v5 }
 0x3d8   : > { %v1875_v7 = vpop.f32.mrf.mxu1 }
 0x3d9   : > { %v940_v8 = vadd.f32 %v1875_v7, %v848_v6 }
 0x3da   : > { %v931_v9 = vpop.f32.mrf.mxu1 }
 0x3db   : > { %v932_v43 = vadd.f32 %v931_v9, %v848_v6  ;;  %966 = vadd.xlane.f32.xlu1 %v940_v8 }
 0x3dc   : > { %v1876_v10 = vpop.f32.mrf.mxu1 }
 0x3dd   : > { %v943_v39 = vadd.f32 %v1876_v10, %v848_v6  ;;  %962 = vadd.xlane.f32.xlu0 %v932_v43 }
 0x3de   : > { %v934_v11 = vpop.f32.mrf.mxu1 }
 0x3df   : > { %v935_v12 = vadd.f32 %v934_v11, %v848_v6  ;;  %968 = vadd.xlane.f32.xlu1 %v943_v39 }
 0x3e0   : > { %v1879_v13 = vpop.f32.mrf.mxu1  ;;  %v1149_v14 = vpop.f32.mrf.mxu0 }
 0x3e1   : > { %964 = vadd.xlane.f32.xlu0 %v935_v12  ;;  %v956_v50 = vadd.f32 %v1879_v13, %v848_v6  ;;  %v1150_v22 = vadd.f32 %v1149_v14, %v286_v37 }
 0x3e2   : > { %v947_v15 = vpop.f32.mrf.mxu1  ;;  %v1899_v17 = vpop.f32.mrf.mxu0 }
 0x3e3   : > { %v948_v18 = vadd.f32 %v947_v15, %v848_v6  ;;  %v1155_v24 = vsel %vm820_vm1, %v1150_v22, 0.0 }
 0x3e4   : > { %v1880_v51 = vpop.f32.mrf.mxu1  ;;  %v1152_v19 = vpop.f32.mrf.mxu0 }
 0x3e5   : > { %970 = vadd.xlane.f32.xlu0 %v948_v18  ;;  %v959_v23 = vadd.f32 %v1880_v51, %v848_v6 }
 0x3e6   : > { %v950_v16 = vpop.f32.mrf.mxu1  ;;  %v1900_v20 = vpop.f32.mrf.mxu0 }
 0x3e7   : > { %v951_v21 = vadd.f32 %v950_v16, %v848_v6 }
 0x3e9   : > { %972 = vadd.xlane.f32.xlu1 %v951_v21  ;;  %974 = vadd.xlane.f32.xlu0 %v956_v50 }
 0x3ed   : > { %976 = vadd.xlane.f32.xlu1 %v959_v23  ;;  %1156 = vadd.xlane.f32.xlu0 %v1155_v24 }
 0x464   : > { %v967_v58 = vpop.xlane.xlu1 %966 }
 0x465   : > { %v980_v25 = vmul.f32 0.0078125, %v967_v58 }
 0x466   : > { %v963_v26 = vpop.xlane.xlu0 %962 }
 0x467   : > { %v2472_v59 = vsub.f32 %v940_v8, %v980_v25  ;;  %v978_v28 = vmul.f32 0.0078125, %v963_v26 }
 0x468   : > { %v969_v29 = vpop.xlane.xlu1 %968 }
 0x469   : > { %v2474_v34 = vsub.f32 %v932_v43, %v978_v28  ;;  %v981_v35 = vmul.f32 0.0078125, %v969_v29  ;;  %v996_v32 = vmul.f32 %v2472_v59, %v2472_v59  ;;  %v2517_v28 = vld [vmem:[%s2739_s6 + $0x5] sm:$0x1] }
 0x46a   : > { %v965_v36 = vpop.xlane.xlu0 %964 }
 0x46b   : > { %v2478_v38 = vsub.f32 %v943_v39, %v981_v35  ;;  %v979_v40 = vmul.f32 0.0078125, %v965_v36  ;;  %1006 = vadd.xlane.f32.xlu0 %v996_v32  ;;  %v994_v41 = vmul.f32 %v2474_v34, %v2474_v34 }
 0x46d   : > { %v2482_v45 = vsub.f32 %v935_v12, %v979_v40  ;;  %1002 = vadd.xlane.f32.xlu1 %v994_v41  ;;  %v997_v46 = vmul.f32 %v2478_v38, %v2478_v38  ;;  %v1065_v41 = vrot.slane %v2517_v28, %v2347_v4 }
 0x46e   : > { %v971_v47 = vpop.xlane.xlu0 %970 }
 0x46f   : > { %v982_v48 = vmul.f32 0.0078125, %v971_v47  ;;  %1008 = vadd.xlane.f32.xlu0 %v997_v46  ;;  %v995_v49 = vmul.f32 %v2482_v45, %v2482_v45 }
 0x471   : > { %v2488_v52 = vsub.f32 %v948_v18, %v982_v48  ;;  %1004 = vadd.xlane.f32.xlu1 %v995_v49 }
 0x472   : > { %v973_v53 = vpop.xlane.xlu1 %972  ;;  %v975_v54 = vpop.xlane.xlu0 %974 }
 0x473   : > { %v983_v57 = vmul.f32 0.0078125, %v973_v53  ;;  %v984_v60 = vmul.f32 0.0078125, %v975_v54  ;;  %v998_v61 = vmul.f32 %v2488_v52, %v2488_v52 }
 0x475   : > { %v2492_v62 = vsub.f32 %v951_v21, %v983_v57  ;;  %v2494_v31 = vsub.f32 %v956_v50, %v984_v60  ;;  %1010 = vadd.xlane.f32.xlu1 %v998_v61 }
 0x476   : > { %v977_v63 = vpop.xlane.xlu1 %976  ;;  %v1157_v0 = vpop.xlane.xlu0 %1156 }
 0x477   : > { %v985_v33 = vmul.f32 0.0078125, %v977_v63  ;;  %v1158_v5 = vmul.f32 0.0078125, %v1157_v0  ;;  %v999_v37 = vmul.f32 %v2492_v62, %v2492_v62  ;;  %v1000_v6 = vmul.f32 %v2494_v31, %v2494_v31 }
 0x479   : > { %v2500_v7 = vsub.f32 %v959_v23, %v985_v33  ;;  %v2502_v8 = vsub.f32 %v1150_v22, %v1158_v5  ;;  %1012 = vadd.xlane.f32.xlu0 %v999_v37  ;;  %1014 = vadd.xlane.f32.xlu1 %v1000_v6  ;;  %v2512_v23 = vld [vmem:[%s2739_s6 + $0x4] sm:$0x1] }
 0x47a   : > { %v1053_v29 = vrot.slane %v2512_v23, %v2347_v4 }
 0x47b   : > { %v1001_v9 = vmul.f32 %v2500_v7, %v2500_v7  ;;  %v1160_v43 = vmul.f32 %v2502_v8, %v2502_v8 }
 0x47d   : > { %1016 = vadd.xlane.f32.xlu0 %v1001_v9  ;;  %v1161_v10 = vsel %vm820_vm1, %v1160_v43, 0.0 }
 0x47e   : > { %1162 = vadd.xlane.f32.xlu1 %v1161_v10 }
 0x4f4   : > { %v1007_v39 = vpop.xlane.xlu0 %1006 }
 0x4f5   : > { %v1020_v11 = vmul.f32 0.0078125, %v1007_v39 }
 0x4f6   : > { %v1003_v12 = vpop.xlane.xlu1 %1002 }
 0x4f7   : > { %v1028_v13 = vadd.f32 1e-05, %v1020_v11  ;;  %v1018_v14 = vmul.f32 0.0078125, %v1003_v12 }
 0x4f8   : > { %v1009_v15 = vpop.xlane.xlu0 %1008 }
 0x4f9   : > { %2006 = vrsqrt.f32 %v1028_v13  ;;  %v1026_v17 = vadd.f32 1e-05, %v1018_v14  ;;  %v1021_v18 = vmul.f32 0.0078125, %v1009_v15 }
 0x4fa   : > { %v1005_v51 = vpop.xlane.xlu1 %1004 }
 0x4fb   : > { %2008 = vrsqrt.f32 %v1026_v17  ;;  %v1029_v19 = vadd.f32 1e-05, %v1021_v18  ;;  %v1019_v16 = vmul.f32 0.0078125, %v1005_v51 }
 0x4fd   : > { %2010 = vrsqrt.f32 %v1029_v19  ;;  %v1027_v20 = vadd.f32 1e-05, %v1019_v16 }
 0x4fe   : > { %v1011_v50 = vpop.xlane.xlu1 %1010 }
 0x4ff   : > { %2012 = vrsqrt.f32 %v1027_v20  ;;  %v1022_v21 = vmul.f32 0.0078125, %v1011_v50 }
 0x501   : > { %v1030_v22 = vadd.f32 1e-05, %v1022_v21 }
 0x502   : > { %v1015_v24 = vpop.xlane.xlu1 %1014  ;;  %v1013_v58 = vpop.xlane.xlu0 %1012 }
 0x503   : > { %2014 = vrsqrt.f32 %v1030_v22  ;;  %v1024_v25 = vmul.f32 0.0078125, %v1015_v24  ;;  %v1023_v26 = vmul.f32 0.0078125, %v1013_v58 }
 0x505   : > { %v1032_v35 = vadd.f32 1e-05, %v1024_v25  ;;  %v1031_v32 = vadd.f32 1e-05, %v1023_v26 }
 0x506   : > { %v2007_v36 = vpop.eup %2006  ;;  %v1017_v40 = vpop.xlane.xlu0 %1016 }
 0x507   : > { %v1044_v46 = vmul.f32 %v2007_v36, %v2472_v59  ;;  %2016 = vrsqrt.f32 %v1032_v35  ;;  %v1025_v47 = vmul.f32 0.0078125, %v1017_v40  ;;  %v1163_v48 = vpop.xlane.xlu1 %1162 }
 0x508   : > { %v2009_v49 = vpop.eup %2008  ;;  %2018 = vrsqrt.f32 %v1031_v32  ;;  %v1164_v53 = vmul.f32 0.0078125, %v1163_v48 }
 0x509   : > { %v1056_v54 = vmul.f32 %v1053_v29, %v1044_v46  ;;  %v1042_v57 = vmul.f32 %v2009_v49, %v2474_v34  ;;  %v1033_v60 = vadd.f32 1e-05, %v1025_v47 }
 0x50a   : > { %v2011_v61 = vpop.eup %2010  ;;  %v1165_v63 = vadd.f32 1e-05, %v1164_v53 }
 0x50b   : > { %v1068_v0 = vadd.f32 %v1065_v41, %v1056_v54  ;;  %v1054_v33 = vmul.f32 %v1053_v29, %v1042_v57  ;;  %v1045_v5 = vmul.f32 %v2011_v61, %v2478_v38  ;;  %2020 = vrsqrt.f32 %v1033_v60 }
 0x50c   : > { %v2013_v37 = vpop.eup %2012  ;;  %2022 = vrsqrt.f32 %v1165_v63 }
 0x50d   : > { %v1084_v59 = vmul.f32 0.70710677, %v1068_v0  ;;  %v1066_v6 = vadd.f32 %v1065_v41, %v1054_v33  ;;  %v1057_v9 = vmul.f32 %v1053_v29, %v1045_v5  ;;  %v1043_v43 = vmul.f32 %v2013_v37, %v2482_v45 }
 0x50e   : > { %v1076_v40 = vmul.f32 0.5, %v1068_v0 }
 0x50f   : > { %2024 = verf.f32 %v1084_v59  ;;  %v1082_v10 = vmul.f32 0.70710677, %v1066_v6  ;;  %v1069_v39 = vadd.f32 %v1065_v41, %v1057_v9  ;;  %v1055_v34 = vmul.f32 %v1053_v29, %v1043_v43 }
 0x510   : > { %v2015_v11 = vpop.eup %2014 }
 0x511   : > { %2026 = verf.f32 %v1082_v10  ;;  %v1085_v12 = vmul.f32 0.70710677, %v1069_v39  ;;  %v1046_v13 = vmul.f32 %v2015_v11, %v2488_v52  ;;  %v1067_v14 = vadd.f32 %v1065_v41, %v1055_v34 }
 0x512   : > { %v1077_v57 = vmul.f32 0.5, %v1069_v39 }
 0x513   : > { %2028 = verf.f32 %v1085_v12  ;;  %v1058_v38 = vmul.f32 %v1053_v29, %v1046_v13  ;;  %v1083_v17 = vmul.f32 0.70710677, %v1067_v14  ;;  %v1075_v33 = vmul.f32 0.5, %v1067_v14 }
 0x514   : > { %v2017_v15 = vpop.eup %2016 }
 0x515   : > { %v2019_v18 = vpop.eup %2018  ;;  %v1070_v51 = vadd.f32 %v1065_v41, %v1058_v38  ;;  %v1048_v19 = vmul.f32 %v2017_v15, %v2494_v31  ;;  %2030 = verf.f32 %v1083_v17 }
 0x516   : > { %v1047_v45 = vmul.f32 %v2019_v18, %v2492_v62 }
 0x517   : > { %v1086_v16 = vmul.f32 0.70710677, %v1070_v51  ;;  %v1060_v20 = vmul.f32 %v1053_v29, %v1048_v19  ;;  %v1078_v43 = vmul.f32 0.5, %v1070_v51 }
 0x518   : > { %v2021_v50 = vpop.eup %2020  ;;  %v1059_v21 = vmul.f32 %v1053_v29, %v1047_v45 }
 0x519   : > { %v2023_v22 = vpop.eup %2022  ;;  %2032 = verf.f32 %v1086_v16  ;;  %v1072_v24 = vadd.f32 %v1065_v41, %v1060_v20  ;;  %v1049_v52 = vmul.f32 %v2021_v50, %v2500_v7  ;;  %v1074_v7 = vmul.f32 0.5, %v1066_v6 }
 0x51a   : > { %v1071_v58 = vadd.f32 %v1065_v41, %v1059_v21  ;;  %v1167_v25 = vmul.f32 %v2023_v22, %v2502_v8 }
 0x51b   : > { %v1088_v26 = vmul.f32 0.70710677, %v1072_v24  ;;  %v1061_v35 = vmul.f32 %v1053_v29, %v1049_v52  ;;  %v1080_v51 = vmul.f32 0.5, %v1072_v24 }
 0x51c   : > { %v2025_v32 = vpop.eup %2024  ;;  %v1087_v36 = vmul.f32 0.70710677, %v1071_v58  ;;  %v1168_v31 = vmul.f32 %v1167_v25, %v2512_v23  ;;  %v1079_v21 = vmul.f32 0.5, %v1071_v58 }
 0x51d   : > { %v1100_v62 = vadd.f32 1.0, %v2025_v32  ;;  %2034 = verf.f32 %v1088_v26  ;;  %v1073_v46 = vadd.f32 %v1065_v41, %v1061_v35 }
 0x51e   : > { %v2027_v47 = vpop.eup %2026  ;;  %2036 = verf.f32 %v1087_v36  ;;  %v1169_v48 = vadd.f32 %v1168_v31, %v2517_v28 }
 0x51f   : > { %v2534_v49 = vmul.f32 %v1100_v62, %v1076_v40  ;;  %v1098_v53 = vadd.f32 1.0, %v2027_v47  ;;  %v1089_v54 = vmul.f32 0.70710677, %v1073_v46  ;;  %v1081_v26 = vmul.f32 0.5, %v1073_v46 }
 0x520   : > { %v2029_v8 = vpop.eup %2028  ;;  %v1171_v29 = vmul.f32 0.70710677, %v1169_v48  ;;  %v1170_v40 = vmul.f32 0.5, %v1169_v48 }
 0x521   : > { %v1187_v60 = vrot.slane %v2534_v49, 4  ;;  %v2537_v61 = vmul.f32 %v1098_v53, %v1074_v7  ;;  %v1101_v23 = vadd.f32 1.0, %v2029_v8  ;;  %2038 = verf.f32 %v1089_v54 }
 0x522   : > { %2040 = verf.f32 %v1171_v29  ;;  %v2031_v41 = vpop.eup %2030 }
 0x523   : > { %v1188_v63 = vmax.f32 %v2534_v49, %v1187_v60  ;;  %v1175_v28 = vrot.slane %v2537_v61, 4  ;;  %v2541_v0 = vmul.f32 %v1101_v23, %v1077_v57  ;;  %v1099_v5 = vadd.f32 1.0, %v2031_v41 }
 0x525   : > { %v1176_v37 = vmax.f32 %v2537_v61, %v1175_v28  ;;  %v1193_v59 = vrot.slane %v2541_v0, 4  ;;  %v2545_v9 = vmul.f32 %v1099_v5, %v1075_v33  ;;  %v1189_v10 = vrot.slane %v1188_v63, 2 }
 0x526   : > { %v2033_v6 = vpop.eup %2032 }
 0x527   : > { %v1177_v39 = vrot.slane %v1176_v37, 2  ;;  %v1194_v11 = vmax.f32 %v2541_v0, %v1193_v59  ;;  %v1102_v34 = vadd.f32 1.0, %v2033_v6  ;;  %v1181_v12 = vrot.slane %v2545_v9, 4 }
 0x528   : > { %v1190_v19 = vmax.f32 %v1188_v63, %v1189_v10 }
 0x529   : > { %v1178_v13 = vmax.f32 %v1176_v37, %v1177_v39  ;;  %v1195_v38 = vrot.slane %v1194_v11, 2  ;;  %v2549_v15 = vmul.f32 %v1102_v34, %v1078_v43  ;;  %v1182_v17 = vmax.f32 %v2545_v9, %v1181_v12 }
 0x52a   : > { %v2035_v14 = vpop.eup %2034  ;;  %v1191_v47 = vrot.slane %v1190_v19, 1 }
 0x52b   : > { %v2037_v18 = vpop.eup %2036  ;;  %v1196_v45 = vmax.f32 %v1194_v11, %v1195_v38  ;;  %v1199_v16 = vrot.slane %v2549_v15, 4  ;;  %v1183_v20 = vrot.slane %v1182_v17, 2  ;;  %v1104_v50 = vadd.f32 1.0, %v2035_v14 }
 0x52c   : > { %v1103_v22 = vadd.f32 1.0, %v2037_v18  ;;  %v1179_v52 = vrot.slane %v1178_v13, 1  ;;  %v1192_v28 = vmax.f32 %v1190_v19, %v1191_v47 }
 0x52d   : > { %v1200_v25 = vmax.f32 %v2549_v15, %v1199_v16  ;;  %v1184_v32 = vmax.f32 %v1182_v17, %v1183_v20  ;;  %v2554_v36 = vmul.f32 %v1104_v50, %v1080_v51  ;;  %v1197_v7 = vrot.slane %v1196_v45, 1 }
 0x52e   : > { %v2039_v35 = vpop.eup %2038  ;;  %v2556_v31 = vmul.f32 %v1103_v22, %v1079_v21  ;;  %v1180_v29 = vmax.f32 %v1178_v13, %v1179_v52 }
 0x52f   : > { %v2041_v62 = vpop.eup %2040  ;;  %v1201_v53 = vrot.slane %v1200_v25, 2  ;;  %v1105_v24 = vadd.f32 1.0, %v2039_v35  ;;  %v1185_v54 = vrot.slane %v1184_v32, 1  ;;  %v1211_v58 = vrot.slane %v2554_v36, 4 }
 0x530   : > { %v1205_v8 = vrot.slane %v2556_v31, 4  ;;  %v1173_v57 = vadd.f32 1.0, %v2041_v62  ;;  %v1198_v33 = vmax.f32 %v1196_v45, %v1197_v7 }
 0x531   : > { %v1202_v46 = vmax.f32 %v1200_v25, %v1201_v53  ;;  %v1113_v60 = vmul.f32 %v1105_v24, %v1081_v26  ;;  %v1186_v23 = vmax.f32 %v1184_v32, %v1185_v54  ;;  %v1212_v41 = vmax.f32 %v2554_v36, %v1211_v58 }
 0x532   : > { %v1206_v63 = vmax.f32 %v2556_v31, %v1205_v8  ;;  %v2562_v48 = vmul.f32 %v1173_v57, %v1170_v40 }
 0x533   : > { %v1203_v5 = vrot.slane %v1202_v46, 1  ;;  %v1217_v37 = vrot.slane %v1113_v60, 4  ;;  %v1213_v59 = vrot.slane %v1212_v41, 2 }
 0x534   : > { %v1207_v6 = vrot.slane %v1206_v63, 2  ;;  %v2565_v43 = vmax.f32 %v1180_v29, %v2562_v48  ;;  %v2568_v10 = vmax.f32 %v1186_v23, %v2562_v48  ;;  %v2571_v34 = vmax.f32 %v1192_v28, %v2562_v48 }
 0x535   : > { %v1204_v39 = vmax.f32 %v1202_v46, %v1203_v5  ;;  %v1218_v11 = vmax.f32 %v1113_v60, %v1217_v37  ;;  %v2574_v12 = vmax.f32 %v1198_v33, %v2562_v48  ;;  %v1214_v13 = vmax.f32 %v1212_v41, %v1213_v59 }
 0x536   : > { %v1208_v38 = vmax.f32 %v1206_v63, %v1207_v6  ;;  %v1234_v14 = vrot.slane %v2565_v43, %v2347_v4  ;;  %v1238_v17 = vrot.slane %v2568_v10, %v2347_v4  ;;  %v1242_v45 = vrot.slane %v2571_v34, %v2347_v4 }
 0x537   : > { %v1219_v18 = vrot.slane %v1218_v11, 2  ;;  %v2581_v19 = vmax.f32 %v1204_v39, %v2562_v48  ;;  %v1246_v16 = vrot.slane %v2574_v12, %v2347_v4  ;;  %v1215_v51 = vrot.slane %v1214_v13, 1 }
 0x538   : > { %v1209_v20 = vrot.slane %v1208_v38, 1  ;;  %v1263_v50 = vsub.f32 %v2537_v61, %v1234_v14  ;;  %v1264_v21 = vsub.f32 %v2545_v9, %v1238_v17  ;;  %v1265_v25 = vsub.f32 %v2534_v49, %v1242_v45 }
 0x539   : > { %v1220_v22 = vmax.f32 %v1218_v11, %v1219_v18  ;;  %v1250_v52 = vrot.slane %v2581_v19, %v2347_v4  ;;  %v1266_v26 = vsub.f32 %v2541_v0, %v1246_v16  ;;  %v1216_v35 = vmax.f32 %v1214_v13, %v1215_v51 }
 0x53a   : > { %v1210_v32 = vmax.f32 %v1208_v38, %v1209_v20  ;;  %v1271_v40 = vmul.f32 1.442695, %v1263_v50  ;;  %v1273_v62 = vmul.f32 1.442695, %v1264_v21  ;;  %v1275_v53 = vmul.f32 1.442695, %v1265_v25 }
 0x53b   : > { %v1221_v47 = vrot.slane %v1220_v22, 1  ;;  %v1267_v7 = vsub.f32 %v2549_v15, %v1250_v52  ;;  %v2596_v9 = vmax.f32 %v1216_v35, %v2562_v48  ;;  %v1277_v24 = vmul.f32 1.442695, %v1266_v26 }
 0x53c   : > { %v1228_v61 = vmax.f32 %v1210_v32, %v2562_v48  ;;  %2042 = vpow2.f32 %v1271_v40  ;;  %v1287_v37 = vsub.f32 %v2562_v48, %v2565_v43  ;;  %v1290_v11 = vsub.f32 %v2562_v48, %v2574_v12 }
 0x53d   : > { %v1222_v54 = vmax.f32 %v1220_v22, %v1221_v47  ;;  %v1279_v58 = vmul.f32 1.442695, %v1267_v7  ;;  %v1258_v0 = vrot.slane %v2596_v9, %v2347_v4  ;;  %2044 = vpow2.f32 %v1273_v62 }
 0x53e   : > { %v1254_v49 = vrot.slane %v1228_v61, %v2347_v4  ;;  %2046 = vpow2.f32 %v1275_v53  ;;  %v1295_v13 = vmul.f32 1.442695, %v1287_v37  ;;  %v1291_v43 = vsub.f32 %v2562_v48, %v2581_v19 }
 0x53f   : > { %v1230_v8 = vmax.f32 %v1222_v54, %v2562_v48  ;;  %v1269_v57 = vsub.f32 %v2554_v36, %v1258_v0  ;;  %2048 = vpow2.f32 %v1277_v24  ;;  %v1292_v16 = vsub.f32 %v2562_v48, %v1228_v61 }
 0x540   : > { %v1268_v15 = vsub.f32 %v2556_v31, %v1254_v49  ;;  %2050 = vpow2.f32 %v1279_v58  ;;  %v1301_v25 = vmul.f32 1.442695, %v1290_v11  ;;  %v1303_v26 = vmul.f32 1.442695, %v1291_v43 }
 0x541   : > { %v1262_v29 = vrot.slane %v1230_v8, %v2347_v4  ;;  %v1283_v23 = vmul.f32 1.442695, %v1269_v57  ;;  %v1288_v4 = vsub.f32 %v2562_v48, %v2568_v10  ;;  %v1294_v52 = vsub.f32 %v2562_v48, %v1230_v8 }
 0x542   : > { %v1281_v46 = vmul.f32 1.442695, %v1268_v15  ;;  %v1305_v62 = vmul.f32 1.442695, %v1292_v16 }
 0x543   : > { %v1270_v41 = vsub.f32 %v1113_v60, %v1262_v29  ;;  %v1289_v60 = vsub.f32 %v2562_v48, %v2571_v34  ;;  %v1297_v10 = vmul.f32 1.442695, %v1288_v4  ;;  %v1293_v34 = vsub.f32 %v2562_v48, %v2596_v9 }
 0x544   : > { %2052 = vpow2.f32 %v1281_v46  ;;  %v1309_v24 = vmul.f32 1.442695, %v1294_v52 }
 0x545   : > { %2054 = vpow2.f32 %v1283_v23  ;;  %v1285_v63 = vmul.f32 1.442695, %v1270_v41  ;;  %v1299_v50 = vmul.f32 1.442695, %v1289_v60  ;;  %v1307_v53 = vmul.f32 1.442695, %v1293_v34 }
 0x547   : > { %2056 = vpow2.f32 %v1285_v63 }
 0x548   : > { %2058 = vpow2.f32 %v1295_v13 }
 0x549   : > { %v2043_v28 = vpop.eup %2042  ;;  %2060 = vpow2.f32 %v1297_v10 }
 0x54a   : > { %v2045_v33 = vpop.eup %2044  ;;  %v1311_v59 = vrot.slane %v2043_v28, 4  ;;  %2062 = vpow2.f32 %v1299_v50  ;;  %v1367_v0 = vmul.f32 %v2043_v28, %v2439_v30 }
 0x54b   : > { %v2047_v5 = vpop.eup %2046  ;;  %v1317_v6 = vrot.slane %v2045_v33, 4  ;;  %2064 = vpow2.f32 %v1301_v25  ;;  %v1368_v57 = vmul.f32 %v2045_v33, %v2441_v27 }
 0x54c   : > { %v2049_v31 = vpop.eup %2048  ;;  %v1323_v39 = vrot.slane %v2047_v5, 4  ;;  %v1312_v17 = vadd.f32 %v2043_v28, %v1311_v59  ;;  %2066 = vpow2.f32 %v1303_v26  ;;  %v1369_v23 = vmul.f32 %v2047_v5, %v2445_v42 }
 0x54d   : > { %v2051_v36 = vpop.eup %2050  ;;  %v1329_v38 = vrot.slane %v2049_v31, 4  ;;  %v1318_v51 = vadd.f32 %v2045_v33, %v1317_v6  ;;  %2068 = vpow2.f32 %v1305_v62  ;;  %v1370_v37 = vmul.f32 %v2049_v31, %v2447_v44 }
 0x54e   : > { %v1335_v18 = vrot.slane %v2051_v36, 4  ;;  %v1324_v21 = vadd.f32 %v2047_v5, %v1323_v39  ;;  %v1313_v35 = vrot.slane %v1312_v17, 2  ;;  %2070 = vpow2.f32 %v1307_v53 }
 0x54f   : > { %v1330_v19 = vadd.f32 %v2049_v31, %v1329_v38  ;;  %v1319_v47 = vrot.slane %v1318_v51, 2  ;;  %2072 = vpow2.f32 %v1309_v24  ;;  %v1371_v6 = vmul.f32 %v2051_v36, %v2451_v55 }
 0x550   : > { %v1336_v32 = vadd.f32 %v2051_v36, %v1335_v18  ;;  %v1325_v61 = vrot.slane %v1324_v21, 2  ;;  %v1314_v48 = vadd.f32 %v1313_v35, %v1312_v17  ;;  %v1375_v30 = vrot.slane %v1367_v0, 4 }
 0x551   : > { %v2053_v14 = vpop.eup %2052  ;;  %v1331_v54 = vrot.slane %v1330_v19, 2  ;;  %v1320_v8 = vadd.f32 %v1319_v47, %v1318_v51  ;;  %v1381_v27 = vrot.slane %v1368_v57, 4  ;;  %v1387_v42 = vrot.slane %v1369_v23, 4 }
 0x552   : > { %v2055_v45 = vpop.eup %2054  ;;  %v1341_v20 = vrot.slane %v2053_v14, 4  ;;  %v1337_v49 = vrot.slane %v1336_v32, 2  ;;  %v1326_v29 = vadd.f32 %v1325_v61, %v1324_v21  ;;  %v1315_v59 = vrot.slane %v1314_v48, 1 }
 0x553   : > { %v1347_v12 = vrot.slane %v2055_v45, 4  ;;  %v1332_v41 = vadd.f32 %v1331_v54, %v1330_v19  ;;  %v1321_v28 = vrot.slane %v1320_v8, 1  ;;  %v1372_v39 = vmul.f32 %v2053_v14, %v2453_v56 }
 0x554   : > { %v2057_v22 = vpop.eup %2056  ;;  %v1342_v7 = vadd.f32 %v2053_v14, %v1341_v20  ;;  %v1338_v4 = vadd.f32 %v1337_v49, %v1336_v32  ;;  %v1327_v33 = vrot.slane %v1326_v29, 1  ;;  %v1373_v13 = vmul.f32 %v2055_v45, %v2457_v1 }
 0x555   : > { %v1353_v40 = vrot.slane %v2057_v22, 4  ;;  %v1348_v9 = vadd.f32 %v2055_v45, %v1347_v12  ;;  %v1333_v5 = vrot.slane %v1332_v41, 1  ;;  %v1374_v43 = vmul.f32 %v2057_v22, %v2459_v2  ;;  %v2627_v31 = vpop.eup %2058 }
 0x556   : > { %v1343_v15 = vrot.slane %v1342_v7, 2  ;;  %v1393_v44 = vrot.slane %v1370_v37, 4  ;;  %v1316_v17 = vadd.f32 %v1315_v59, %v1314_v48  ;;  %v1339_v55 = vrot.slane %v1338_v4, 1  ;;  %v2629_v51 = vpop.eup %2060 }
 0x557   : > { %v1354_v58 = vadd.f32 %v2057_v22, %v1353_v40  ;;  %v1349_v46 = vrot.slane %v1348_v9, 2  ;;  %v1376_v36 = vadd.f32 %v1375_v30, %v1367_v0  ;;  %v1399_v18 = vrot.slane %v1371_v6, 4  ;;  %v2631_v50 = vpop.eup %2062 }
 0x558   : > { %v1344_v60 = vadd.f32 %v1343_v15, %v1342_v7  ;;  %v1322_v16 = vadd.f32 %v1321_v28, %v1320_v8  ;;  %v1382_v56 = vadd.f32 %v1381_v27, %v1368_v57  ;;  %v1405_v14 = vrot.slane %v1372_v39, 4  ;;  %v2633_v52 = vpop.eup %2064 }
 0x559   : > { %v1355_v63 = vrot.slane %v1354_v58, 2  ;;  %v1350_v11 = vadd.f32 %v1349_v46, %v1348_v9  ;;  %v1328_v20 = vadd.f32 %v1327_v33, %v1326_v29  ;;  %v1388_v45 = vadd.f32 %v1387_v42, %v1369_v23  ;;  %v2636_v32 = vpop.eup %2066 }
 0x55a   : > { %v1345_v10 = vrot.slane %v1344_v60, 1  ;;  %v1411_v34 = vrot.slane %v1373_v13, 4  ;;  %v1334_v2 = vadd.f32 %v1333_v5, %v1332_v41  ;;  %v1394_v12 = vadd.f32 %v1393_v44, %v1370_v37  ;;  %v2069_v53 = vpop.eup %2068 }
 0x55b   : > { %v1356_v38 = vadd.f32 %v1355_v63, %v1354_v58  ;;  %v1351_v1 = vrot.slane %v1350_v11, 1  ;;  %v1417_v22 = vrot.slane %v1374_v43, 4  ;;  %v1340_v25 = vadd.f32 %v1339_v55, %v1338_v4  ;;  %v2640_v58 = vpop.eup %2070 }
 0x55c   : > { %v1359_v19 = vadd.f32 %v2627_v31, %v1316_v17  ;;  %v1377_v26 = vrot.slane %v1376_v36, 2  ;;  %v1400_v35 = vadd.f32 %v1399_v18, %v1371_v6  ;;  %v1346_v40 = vadd.f32 %v1345_v10, %v1344_v60  ;;  %v2073_v15 = vpop.eup %2072 }
 0x55d   : > { %v1357_v21 = vrot.slane %v1356_v38, 1  ;;  %v1360_v62 = vadd.f32 %v2629_v51, %v1322_v16  ;;  %v1383_v47 = vrot.slane %v1382_v56, 2  ;;  %v1406_v7 = vadd.f32 %v1405_v14, %v1372_v39 }
 0x55e   : > { %v1352_v61 = vadd.f32 %v1351_v1, %v1350_v11  ;;  %v1361_v9 = vadd.f32 %v2631_v50, %v1328_v20  ;;  %v1389_v24 = vrot.slane %v1388_v45, 2  ;;  %v1412_v54 = vadd.f32 %v1411_v34, %v1373_v13 }
 0x55f   : > { %v1358_v48 = vadd.f32 %v1357_v21, %v1356_v38  ;;  %v1362_v49 = vadd.f32 %v2633_v52, %v1334_v2  ;;  %v1395_v0 = vrot.slane %v1394_v12, 2  ;;  %v1418_v8 = vadd.f32 %v1417_v22, %v1374_v43 }
 0x560   : > { %v1363_v57 = vadd.f32 %v2636_v32, %v1340_v25  ;;  %v1378_v29 = vadd.f32 %v1377_v26, %v1376_v36  ;;  %v1401_v46 = vrot.slane %v1400_v35, 2  ;;  %2074 = vrcp.f32 %v1359_v19 }
 0x561   : > { %v1364_v23 = vadd.f32 %v2069_v53, %v1346_v40  ;;  %v1384_v41 = vadd.f32 %v1383_v47, %v1382_v56  ;;  %v1407_v63 = vrot.slane %v1406_v7, 2  ;;  %2076 = vrcp.f32 %v1360_v62 }
 0x562   : > { %v1365_v37 = vadd.f32 %v2640_v58, %v1352_v61  ;;  %v1390_v59 = vadd.f32 %v1389_v24, %v1388_v45  ;;  %v1413_v4 = vrot.slane %v1412_v54, 2  ;;  %2078 = vrcp.f32 %v1361_v9 }
 0x563   : > { %v1366_v6 = vadd.f32 %v2073_v15, %v1358_v48  ;;  %v1396_v30 = vadd.f32 %v1395_v0, %v1394_v12  ;;  %v1419_v28 = vrot.slane %v1418_v8, 2  ;;  %2080 = vrcp.f32 %v1362_v49 }
 0x564   : > { %v1402_v60 = vadd.f32 %v1401_v46, %v1400_v35  ;;  %2082 = vrcp.f32 %v1363_v57  ;;  %v1385_v39 = vrot.slane %v1384_v41, 1  ;;  %v1408_v27 = vadd.f32 %v1407_v63, %v1406_v7 }
 0x565   : > { %2084 = vrcp.f32 %v1364_v23  ;;  %v1391_v33 = vrot.slane %v1390_v59, 1  ;;  %v1414_v11 = vadd.f32 %v1413_v4, %v1412_v54  ;;  %v1379_v13 = vrot.slane %v1378_v29, 1 }
 0x566   : > { %2086 = vrcp.f32 %v1365_v37  ;;  %v1397_v42 = vrot.slane %v1396_v30, 1  ;;  %v1420_v5 = vadd.f32 %v1419_v28, %v1418_v8  ;;  %v1403_v38 = vrot.slane %v1402_v60, 1 }
 0x567   : > { %2088 = vrcp.f32 %v1366_v6  ;;  %v1386_v43 = vadd.f32 %v1385_v39, %v1384_v41  ;;  %v1409_v44 = vrot.slane %v1408_v27, 1  ;;  %v1392_v17 = vadd.f32 %v1391_v33, %v1390_v59 }
 0x568   : > { %v1415_v55 = vrot.slane %v1414_v11, 1  ;;  %v1380_v36 = vadd.f32 %v1379_v13, %v1378_v29  ;;  %v1398_v18 = vadd.f32 %v1397_v42, %v1396_v30  ;;  %v1421_v16 = vrot.slane %v1420_v5, 1 }
 0x569   : > { %v1424_v10 = vmul.f32 %v2629_v51, %v2461_v3  ;;  %v1404_v56 = vadd.f32 %v1403_v38, %v1402_v60  ;;  %v1425_v14 = vmul.f32 %v2631_v50, %v2461_v3  ;;  %v1410_v1 = vadd.f32 %v1409_v44, %v1408_v27 }
 0x56a   : > { %v1423_v45 = vmul.f32 %v2627_v31, %v2461_v3  ;;  %v1426_v34 = vmul.f32 %v2633_v52, %v2461_v3  ;;  %v1416_v12 = vadd.f32 %v1415_v55, %v1414_v11  ;;  %v1427_v51 = vmul.f32 %v2636_v32, %v2461_v3 }
 0x56b   : > { %v1432_v2 = vadd.f32 %v1424_v10, %v1386_v43  ;;  %v1428_v22 = vmul.f32 %v2069_v53, %v2461_v3  ;;  %v1433_v25 = vadd.f32 %v1425_v14, %v1392_v17  ;;  %v1422_v19 = vadd.f32 %v1421_v16, %v1420_v5 }
 0x56c   : > { %v1431_v26 = vadd.f32 %v1423_v45, %v1380_v36  ;;  %v1434_v35 = vadd.f32 %v1426_v34, %v1398_v18  ;;  %v1429_v31 = vmul.f32 %v2640_v58, %v2461_v3  ;;  %v1430_v52 = vmul.f32 %v2073_v15, %v2461_v3 }
 0x56d   : > { %v2075_v20 = vpop.eup %2074  ;;  %v1435_v47 = vadd.f32 %v1427_v51, %v1404_v56  ;;  %v1436_v9 = vadd.f32 %v1428_v22, %v1410_v1 }
 0x56e   : > { %v2077_v21 = vpop.eup %2076  ;;  %v1447_v24 = vmul.f32 %v2075_v20, %v1431_v26  ;;  %v1437_v48 = vadd.f32 %v1429_v31, %v1416_v12  ;;  %v1438_v57 = vadd.f32 %v1430_v52, %v1422_v19 }
 0x56f   : > { %v2079_v50 = vpop.eup %2078  ;;  %v1448_v40 = vmul.f32 %v2077_v21, %v1432_v2 }
 0x570   : > { %v2081_v62 = vpop.eup %2080  ;;  %v1449_v7 = vmul.f32 %v2079_v50, %v1433_v25 }
 0x571   : > { %v2083_v61 = vpop.eup %2082  ;;  %v1450_v32 = vmul.f32 %v2081_v62, %v1434_v35  ;;  %v1463_v54 = vrot.slane %v1448_v40, 7 }
 0x572   : > { %v2085_v53 = vpop.eup %2084  ;;  %v1451_v49 = vmul.f32 %v2083_v61, %v1435_v47  ;;  %v1466_v0 = vrot.slane %v1449_v7, 6 }
 0x573   : > { %v2087_v8 = vpop.eup %2086  ;;  %v1452_v29 = vmul.f32 %v2085_v53, %v1436_v9  ;;  %v1465_v46 = vsel %vm1464_vm2, %v1463_v54, %v1447_v24  ;;  %v1469_v58 = vrot.slane %v1450_v32, 5 }
 0x574   : > { %v2089_v23 = vpop.eup %2088  ;;  %v1453_v3 = vmul.f32 %v2087_v8, %v1437_v48  ;;  %v1468_v15 = vsel %vm1467_vm3, %v1466_v0, %v1465_v46  ;;  %v1472_v41 = vrot.slane %v1451_v49, 4  ;;  %v1729_v48 = vld [vmem:[%s2739_s6 + $0x6] ss:$0 sm:$0xff] }
 0x575   : > { %v1454_v63 = vmul.f32 %v2089_v23, %v1438_v57  ;;  %v1471_v37 = vsel %vm1470_vm4, %v1469_v58, %v1468_v15  ;;  %v1475_v59 = vrot.slane %v1452_v29, 3 }
 0x576   : > { %v1474_v4 = vsel %vm1473_vm5, %v1472_v41, %v1471_v37  ;;  %v1478_v6 = vrot.slane %v1453_v3, 2 }
 0x577   : > { %v1477_v30 = vsel %vm1476_vm6, %v1475_v59, %v1474_v4  ;;  %v1481_v28 = vrot.slane %v1454_v63, 1 }
 0x578   : > { %v1480_v60 = vsel %vm1479_vm7, %v1478_v6, %v1477_v30 }
 0x579   : > { %v1483_v39 = vsel %vm1482_vm8, %v1481_v28, %v1480_v60 }
 0x57a   : > { %1485 = vadd.xlane.f32.xlu0 %v1483_v39 }
 0x603   : > { %v1486_v27 = vpop.xlane.xlu0 %1485 }
 0x604   : > { %v1487_v33 = vmul.f32 0.0078125, %v1486_v27  ;;  %v1730_v27 = vld [vmem:[%s2739_s6 + $0x7] ss:$0 sm:$0xff] }
 0x606   : > { %v1489_v11 = vrot.slane %v1487_v33, 1  ;;  %v1490_v13 = vrot.slane %v1487_v33, 2  ;;  %v1491_v42 = vrot.slane %v1487_v33, 3  ;;  %v1492_v5 = vrot.slane %v1487_v33, 4 }
 0x607   : > { %v1493_v38 = vrot.slane %v1487_v33, 5  ;;  %v1494_v43 = vrot.slane %v1487_v33, 6  ;;  %v1495_v44 = vrot.slane %v1487_v33, 7  ;;  %v1504_v17 = vsub.f32 %v1447_v24, %v1487_v33 }
 0x608   : > { %v1505_v55 = vsub.f32 %v1448_v40, %v1489_v11  ;;  %v1506_v36 = vsub.f32 %v1449_v7, %v1490_v13  ;;  %v1507_v18 = vsub.f32 %v1450_v32, %v1491_v42  ;;  %v1508_v16 = vsub.f32 %v1451_v49, %v1492_v5 }
 0x609   : > { %v1509_v10 = vsub.f32 %v1452_v29, %v1493_v38  ;;  %v1510_v56 = vsub.f32 %v1453_v3, %v1494_v43  ;;  %v1511_v14 = vsub.f32 %v1454_v63, %v1495_v44  ;;  %v1512_v2 = vmul.f32 %v1504_v17, %v1504_v17 }
 0x60a   : > { %v1513_v20 = vmul.f32 %v1505_v55, %v1505_v55  ;;  %v1514_v1 = vmul.f32 %v1506_v36, %v1506_v36  ;;  %v1515_v45 = vmul.f32 %v1507_v18, %v1507_v18  ;;  %v1516_v34 = vmul.f32 %v1508_v16, %v1508_v16 }
 0x60b   : > { %v1517_v21 = vmul.f32 %v1509_v10, %v1509_v10  ;;  %v1518_v22 = vmul.f32 %v1510_v56, %v1510_v56  ;;  %v1519_v25 = vmul.f32 %v1511_v14, %v1511_v14 }
 0x60c   : > { %v1528_v12 = vrot.slane %v1513_v20, 7  ;;  %v1530_v51 = vrot.slane %v1514_v1, 6  ;;  %v1532_v19 = vrot.slane %v1515_v45, 5  ;;  %v1534_v35 = vrot.slane %v1516_v34, 4 }
 0x60d   : > { %v1536_v62 = vrot.slane %v1517_v21, 3  ;;  %v1538_v52 = vrot.slane %v1518_v22, 2  ;;  %v1540_v7 = vrot.slane %v1519_v25, 1 }
 0x60e   : > { %v1529_v50 = vsel %vm1464_vm2, %v1528_v12, %v1512_v2 }
 0x60f   : > { %v1531_v26 = vsel %vm1467_vm3, %v1530_v51, %v1529_v50 }
 0x610   : > { %v1533_v40 = vsel %vm1470_vm4, %v1532_v19, %v1531_v26 }
 0x611   : > { %v1535_v31 = vsel %vm1473_vm5, %v1534_v35, %v1533_v40 }
 0x612   : > { %v1537_v47 = vsel %vm1476_vm6, %v1536_v62, %v1535_v31 }
 0x613   : > { %v1539_v61 = vsel %vm1479_vm7, %v1538_v52, %v1537_v47 }
 0x614   : > { %v1541_v9 = vsel %vm1482_vm8, %v1540_v7, %v1539_v61 }
 0x615   : > { %1543 = vadd.xlane.f32.xlu1 %v1541_v9 }
 0x69e   : > { %v1544_v24 = vpop.xlane.xlu1 %1543 }
 0x69f   : > { %v1545_v32 = vmul.f32 0.0078125, %v1544_v24 }
 0x6a1   : > { %v1546_v54 = vadd.f32 1e-05, %v1545_v32 }
 0x6a3   : > { %2090 = vrsqrt.f32 %v1546_v54 }
 0x6b0   : > { %v2091_v53 = vpop.eup %2090 }
 0x6b1   : > { %v1549_v49 = vrot.slane %v2091_v53, 1  ;;  %v1550_v0 = vrot.slane %v2091_v53, 2  ;;  %v1551_v8 = vrot.slane %v2091_v53, 3  ;;  %v1552_v57 = vrot.slane %v2091_v53, 4 }
 0x6b2   : > { %v1553_v29 = vrot.slane %v2091_v53, 5  ;;  %v1554_v46 = vrot.slane %v2091_v53, 6  ;;  %v1555_v58 = vrot.slane %v2091_v53, 7  ;;  %v1564_v23 = vmul.f32 %v2091_v53, %v1504_v17 }
 0x6b3   : > { %v1565_v3 = vmul.f32 %v1549_v49, %v1505_v55  ;;  %v1566_v15 = vmul.f32 %v1550_v0, %v1506_v36  ;;  %v1567_v41 = vmul.f32 %v1551_v8, %v1507_v18  ;;  %v1568_v63 = vmul.f32 %v1552_v57, %v1508_v16 }
 0x6b4   : > { %v1569_v37 = vmul.f32 %v1553_v29, %v1509_v10  ;;  %v1570_v59 = vmul.f32 %v1554_v46, %v1510_v56  ;;  %v1571_v4 = vmul.f32 %v1555_v58, %v1511_v14  ;;  %v1576_v6 = vmul.f32 %v1729_v48, %v1564_v23 }
 0x6b5   : > { %v1577_v30 = vmul.f32 %v1729_v48, %v1565_v3  ;;  %v1578_v28 = vmul.f32 %v1729_v48, %v1566_v15  ;;  %v1579_v60 = vmul.f32 %v1729_v48, %v1567_v41  ;;  %v1580_v39 = vmul.f32 %v1729_v48, %v1568_v63 }
 0x6b6   : > { %v1581_v33 = vmul.f32 %v1729_v48, %v1569_v37  ;;  %v1582_v11 = vmul.f32 %v1729_v48, %v1570_v59  ;;  %v1583_v13 = vmul.f32 %v1729_v48, %v1571_v4  ;;  %v1588_v44 = vadd.f32 %v1730_v27, %v1576_v6 }
 0x6b7   : > { %v1589_v42 = vadd.f32 %v1730_v27, %v1577_v30  ;;  %v1590_v5 = vadd.f32 %v1730_v27, %v1578_v28  ;;  %v1591_v38 = vadd.f32 %v1730_v27, %v1579_v60  ;;  %v1592_v43 = vadd.f32 %v1730_v27, %v1580_v39 }
 0x6b8   : > { %v1593_v17 = vadd.f32 %v1730_v27, %v1581_v33  ;;  %v1594_v18 = vadd.f32 %v1730_v27, %v1582_v11  ;;  %v1595_v16 = vadd.f32 %v1730_v27, %v1583_v13 }
 0x6b9   : > { %v1604_v55 = vrot.slane %v1589_v42, 7  ;;  %v1606_v36 = vrot.slane %v1590_v5, 6  ;;  %v1608_v56 = vrot.slane %v1591_v38, 5  ;;  %v1610_v20 = vrot.slane %v1592_v43, 4 }
 0x6ba   : > { %v1612_v45 = vrot.slane %v1593_v17, 3  ;;  %v1614_v2 = vrot.slane %v1594_v18, 2  ;;  %v1616_v12 = vrot.slane %v1595_v16, 1 }
 0x6bb   : > { %v1605_v10 = vsel %vm1464_vm2, %v1604_v55, %v1588_v44 }
 0x6bc   : > { %v1607_v14 = vsel %vm1467_vm3, %v1606_v36, %v1605_v10 }
 0x6bd   : > { %v1609_v1 = vsel %vm1470_vm4, %v1608_v56, %v1607_v14 }
 0x6be   : > { %v1611_v34 = vsel %vm1473_vm5, %v1610_v20, %v1609_v1 }
 0x6bf   : > { %v1613_v21 = vsel %vm1476_vm6, %v1612_v45, %v1611_v34 }
 0x6c0   : > { %v1615_v51 = vsel %vm1479_vm7, %v1614_v2, %v1613_v21 }
 0x6c1   : > { %v1617_v22 = vsel %vm1482_vm8, %v1616_v12, %v1615_v51 }
 0x6c2   : > { %1619 = vst [vmem:[%s272_s29] sm:$0xff] %v1617_v22 }
 0x6c3   : > { %2105 = shalt.err (!%p2102_p3)
}
 0x6c4   : > { %s2106_s19 = scalar_lea.hbm %s2695_s14, 128  ;;  %s2110_s21 = scalar_lea.hbm %s2740_s7, 256 }
 0x6c5   : > { %p2107_p4 = scmp.ne.s32.totalorder %s2695_s14, %s2106_s19  ;;  %p2111_p9 = scmp.lt.s32.totalorder %s2695_s14, %s2740_s7 }
 0x6c6   : > { %p2112_p10 = scmp.lt.s32.totalorder %s2110_s21, %s2106_s19 }
 0x6c7   : > { %p2108_p7 = pnand %p2107_p4, %p2235_p5 }
 0x6c8   : > { %p2113_p11 = por %p2112_p10, %p2111_p9 }
 0x6c9   : > { %p2109_p8 = pneg %p2108_p7 }
 0x6cb   : > { %p2114_p12 = pnand %p2113_p11, %p2109_p8 }
 0x6cd   : > { %2117 = shalt.err (!%p2114_p12)
}
 0x6ce   : > { %1901 = dma.vmem_to_hbm [thread:$0]  (%p2235_p5), %s1635_s8, 128, %s2695_s14, %s1621_s28  }
 0x6cf PF: > { %p1907_p13 = scmp.ge.s32.totalorder %s2152_s27, 2  ;;  %s1646_s9 = sand.u32 1, %s2140_s24  }
 0x6d0   : > { %s1647_s13 = scalar_lea.sflag [#allocation3], %s1646_s9 }
 0x6d1   : > { %p1904_p0 = pnand %p1907_p13, %p2239_p6 }
 0x6d3   : > { %p1905_p1 = pneg %p1904_p0 }
 0x6d5   : > { %2135 = dma.done.wait (%p1905_p1), %s1647_s13, 128  }
 0x6d6   : > { %2137 = vsyncadd (%p1905_p1), %s1647_s13, 4294967168  ;;  %p17_p2 = scmp.ge.s32.totalorder %s2222_s30, 4   ;;  %s2743_s24 = smov %s2144_s25 }
 0x6d7   : > { %s2744_s25 = smov %s2148_s26  ;;  %s2745_s26 = smov %s2233_s10 }
 0x6d8   : > { %s2746_s27 = smov %s2222_s30  ;;  %19 = sbr.rel (!%p17_p2) target bundleno = 3 (0x3), region = 83 }
 0x6dd   :  { %1652 = vsyncpa [#allocation3], 1 }
 0x6de   :  { %1654 = vsyncpa [#allocation3 + $0x1], 1 }

</bundles_post_ra>
